<compile_context>
chip_gen: v7x
topology: tpu7x:2x2x1
jax: 0.10.0
libtpu: 0.0.40
codegen_flags: <defaults>
</compile_context>

<pallas_src>
import functools

import numpy as np
import jax
import jax.numpy as jnp
from jax.experimental import pallas as pl
from jax.experimental.pallas import tpu as pltpu

PAD = 128  # lane / contraction padding unit


# TODO(synk): spaCy noun extraction / CaptionOntology has no Pallas equivalent;
# the ontology is derived with a deterministic string split instead.
def create_ontology_from_string(caption):
    nouns = [w.strip() for w in caption.split(".") if w.strip()]
    return {w: w for w in nouns}


# ----------------------------- Pallas kernel -----------------------------

def detector_kernel(num_classes, patch_ref, w_emb_ref, b_emb_ref,
                    w_head_ref, b_head_ref, xform_ref, out_ref):
    # 1) patch/query embedding: bf16 MXU matmul, f32 accumulate, bias+ReLU in f32.
    feat = jnp.dot(patch_ref[...], w_emb_ref[...],
                   preferred_element_type=jnp.float32)
    feat = jnp.maximum(feat + b_emb_ref[...], 0.0)

    # 2) fused grounding-similarity + box-head: single [Dpad, 2*128] matmul,
    #    sigmoid (EUP) on both halves (scores and cxcywh) in one shot.
    combo = jnp.dot(feat.astype(jnp.bfloat16), w_head_ref[...],
                    preferred_element_type=jnp.float32)
    combo = jax.nn.sigmoid(combo + b_head_ref[...])

    scores = combo[:, :PAD]          # lane-aligned split (128 boundary)
    cxcywh = combo[:, PAD:]

    # Zero padded ontology lanes (sigmoid(0)=0.5 would pollute max/argmax).
    lane = jax.lax.broadcasted_iota(jnp.int32, scores.shape, 1)
    scores = jnp.where(lane < num_classes, scores, 0.0)

    # 3) boxes: cxcywh -> pixel xyxy via padded 128x128 affine (4x4 non-zero),
    #    kept on the MXU so the VALU/store slots stay free.
    boxes = jnp.dot(cxcywh.astype(jnp.bfloat16), xform_ref[...],
                    preferred_element_type=jnp.float32)

    # 4) per-row max score + argmax over the K real classes (XLU reduces).
    max_s = jnp.max(scores, axis=-1, keepdims=True)
    arg = jnp.min(jnp.where(scores >= max_s, lane, PAD),
                  axis=-1, keepdims=True).astype(jnp.float32)

    # Pack the detection half: lanes 0..3 = xyxy, lane 4 = max score,
    # lane 5 = class id, rest = 0 (boxes' padded lanes are already 0).
    max_b = jnp.broadcast_to(max_s, boxes.shape)
    arg_b = jnp.broadcast_to(arg, boxes.shape)
    det = jnp.where(lane == 4, max_b, boxes)
    det = jnp.where(lane == 5, arg_b, det)

    # Single lane-dense [TN, 256] output slab; both sub-stores 128-lane aligned.
    out_ref[:, :PAD] = scores
    out_ref[:, PAD:] = det


# ----------------------------- wrapper -----------------------------

def _patchify(image, ps):
    """NCHW -> non-overlapping ps x ps patches -> [B*P, ps*ps*C]."""
    B, C, H, W = image.shape
    Ph, Pw = H // ps, W // ps
    x = jnp.transpose(image, (0, 2, 3, 1))
    x = x.reshape(B, Ph, ps, Pw, ps, C)
    x = jnp.transpose(x, (0, 1, 3, 2, 4, 5)).reshape(B * Ph * Pw, ps * ps * C)
    return x, Ph * Pw


def grounded_sam2_forward(image, params, num_classes, tn=256):
    """image: [B, C, H, W] float32 (NCHW, PyTorch convention)."""
    B = image.shape[0]
    ps = params["patch_size"]
    x, P = _patchify(image, ps)
    N, PD = x.shape

    PDpad, _ = params["w_emb"].shape

    # Pad contraction (feature) dim to the padded weight width; bf16 for MXU.
    x = jnp.pad(x, ((0, 0), (0, PDpad - PD)))
    # Pad query rows so the grid has >= 2 full TN tiles (keeps both v7x TCs busy).
    n_pad = max(pl.cdiv(N, tn), 2) * tn
    x = jnp.pad(x, ((0, n_pad - N), (0, 0))).astype(jnp.bfloat16)

    kernel = functools.partial(detector_kernel, num_classes)

    out_pad = pl.pallas_call(
        kernel,
        grid=(n_pad // tn,),
        in_specs=[
            pl.BlockSpec((tn, PDpad), lambda i: (i, 0)),
            pl.BlockSpec(params["w_emb"].shape, lambda i: (0, 0)),
            pl.BlockSpec(params["b_emb"].shape, lambda i: (0, 0)),
            pl.BlockSpec(params["w_head"].shape, lambda i: (0, 0)),
            pl.BlockSpec(params["b_head"].shape, lambda i: (0, 0)),
            pl.BlockSpec(params["xform"].shape, lambda i: (0, 0)),
        ],
        out_specs=pl.BlockSpec((tn, 2 * PAD), lambda i: (i, 0)),
        out_shape=jax.ShapeDtypeStruct((n_pad, 2 * PAD), jnp.float32),
        compiler_params=pltpu.CompilerParams(
            dimension_semantics=("parallel",),
            vmem_limit_bytes=32 * 1024 * 1024),
    )(x, params["w_emb"], params["b_emb"], params["w_head"],
      params["b_head"], params["xform"])

    scores = out_pad[:N, :num_classes].reshape(B, P, num_classes)
    boxes = out_pad[:N, PAD:PAD + 4].reshape(B, P, 4)
    max_score = out_pad[:N, PAD + 4].reshape(B, P)
    class_id = out_pad[:N, PAD + 5].astype(jnp.int32).reshape(B, P)
    return scores, boxes, max_score, class_id


# ----------------------------- reference (pure JAX, same bf16 path) ----------

def reference_forward(image, params, num_classes):
    ps = params["patch_size"]
    x, P = _patchify(image, ps)
    B = image.shape[0]
    N, PD = x.shape
    PDpad = params["w_emb"].shape[0]
    Kpad = params["xform"].shape[0]

    xb = jnp.pad(x, ((0, 0), (0, PDpad - PD))).astype(jnp.bfloat16)
    feat = jnp.dot(xb, params["w_emb"], preferred_element_type=jnp.float32)
    feat = jnp.maximum(feat + params["b_emb"], 0.0)
    combo = jnp.dot(feat.astype(jnp.bfloat16), params["w_head"],
                    preferred_element_type=jnp.float32)
    combo = jax.nn.sigmoid(combo + params["b_head"])
    scores = combo[:, :num_classes]
    cxcywh = combo[:, Kpad:]
    boxes = jnp.dot(cxcywh.astype(jnp.bfloat16), params["xform"],
                    preferred_element_type=jnp.float32)[:, :4]
    return scores.reshape(B, P, num_classes), boxes.reshape(B, P, 4)


# ----------------------------- parameter setup -----------------------------

def init_params(key, C, H, W, patch_size, embed_dim, num_classes):
    pd = patch_size * patch_size * C
    k1, k2, k3, k4, k5 = jax.random.split(key, 5)
    w_emb = jax.random.normal(k1, (pd, embed_dim), jnp.float32) * 0.1
    b_emb = jax.random.normal(k2, (1, embed_dim), jnp.float32) * 0.1
    text = jax.random.normal(k3, (embed_dim, num_classes), jnp.float32) * 0.1
    w_box = jax.random.normal(k4, (embed_dim, 4), jnp.float32) * 0.1
    b_box = jax.random.normal(k5, (1, 4), jnp.float32) * 0.1

    # cxcywh -> xyxy affine, with pixel scaling folded in.
    t = np.array([[1.0, 0.0, 1.0, 0.0],
                  [0.0, 1.0, 0.0, 1.0],
                  [-0.5, 0.0, 0.5, 0.0],
                  [0.0, -0.5, 0.0, 0.5]], dtype=np.float32)
    scale = np.array([W, H, W, H], dtype=np.float32)
    xform4 = jnp.asarray(t * scale[None, :])

    # Explicit zero-padding to lane-dense 128 shapes; MXU operands in bf16.
    w_emb_p = jnp.zeros((PAD, PAD), jnp.float32).at[:pd, :embed_dim].set(w_emb)
    b_emb_p = jnp.zeros((1, PAD), jnp.float32).at[:, :embed_dim].set(b_emb)
    text_p = jnp.zeros((PAD, PAD), jnp.float32).at[:embed_dim, :num_classes].set(text)
    wbox_p = jnp.zeros((PAD, PAD), jnp.float32).at[:embed_dim, :4].set(w_box)
    # Fused head weight: text similarity (lanes 0..127) ++ box head (lanes 128..255).
    w_head = jnp.concatenate([text_p, wbox_p], axis=1).astype(jnp.bfloat16)
    b_head = jnp.zeros((1, 2 * PAD), jnp.float32).at[:, PAD:PAD + 4].set(b_box)
    xform_p = jnp.zeros((PAD, PAD), jnp.float32).at[:4, :4].set(xform4)

    return {
        "patch_size": patch_size,
        "w_emb": w_emb_p.astype(jnp.bfloat16),   # [128, 128] bf16
        "b_emb": b_emb_p,                        # [1, 128] f32
        "w_head": w_head,                        # [128, 256] bf16
        "b_head": b_head,                        # [1, 256] f32
        "xform": xform_p.astype(jnp.bfloat16),   # [128, 128] bf16
    }


# ----------------------------- driver -----------------------------

if __name__ == "__main__":
    prompt = "person. car. traffic light"
    ontology = create_ontology_from_string(prompt)
    num_classes = len(ontology)  # 3

    # 64x64 image with 4x4 patches -> N = 2*256 = 512 queries = 2 tiles of 256.
    B, C, H, W = 2, 4, 64, 64
    patch_size, embed_dim = 4, 32

    key = jax.random.PRNGKey(0)
    k_img, k_par = jax.random.split(key)
    image = jax.random.normal(k_img, (B, C, H, W), jnp.float32)
    params = init_params(k_par, C, H, W, patch_size, embed_dim, num_classes)

    scores, boxes, max_score, class_id = grounded_sam2_forward(
        image, params, num_classes)
    jax.block_until_ready((scores, boxes, max_score, class_id))

    # Sanity check against a pure-JAX reference (same bf16 matmul path).
    ref_scores, ref_boxes = reference_forward(image, params, num_classes)
    np.testing.assert_allclose(np.asarray(scores), np.asarray(ref_scores),
                               atol=2e-2, rtol=2e-2)
    np.testing.assert_allclose(np.asarray(boxes), np.asarray(ref_boxes),
                               atol=1.0, rtol=2e-2)

    # Host-side thresholding (dynamic-length output, like results.xyxy/class_id).
    box_threshold = 0.4
    ms = np.asarray(max_score)
    cid = np.asarray(class_id)
    bxs = np.asarray(boxes)
    outputs = []
    for b in range(B):
        keep = ms[b] > box_threshold
        outputs.append((bxs[b][keep], cid[b][keep]))   # (xyxy pixels, class ids)

    P = (H // patch_size) * (W // patch_size)
    assert np.asarray(scores).shape == (B, P, num_classes)
    assert np.asarray(boxes).shape == (B, P, 4)
    print("KERNEL_OK")
</pallas_src>

<mosaic_0001>
module attributes {stable_mosaic.version = 11 : i64} {
  func.func @detector_kernel(%arg0: i32, %arg1: memref<256x128xbf16, #tpu.memory_space<vmem>>, %arg2: memref<128x128xbf16, #tpu.memory_space<vmem>>, %arg3: memref<1x128xf32, #tpu.memory_space<vmem>>, %arg4: memref<128x256xbf16, #tpu.memory_space<vmem>>, %arg5: memref<1x256xf32, #tpu.memory_space<vmem>>, %arg6: memref<128x128xbf16, #tpu.memory_space<vmem>>, %arg7: memref<256x256xf32, #tpu.memory_space<vmem>>) attributes {dimension_semantics = [#tpu.dimension_semantics<parallel>], iteration_bounds = array<i64: 2>, scalar_prefetch = 0 : i64, scratch_operands = 0 : i64, tpu.core_type = #tpu.core_type<tc>, window_params = [{transform_indices = @transform_0, window_bounds = array<i64: 256, 128>}, {pipeline_mode = #tpu.pipeline_mode<synchronous>, transform_indices = @transform_1, window_bounds = array<i64: 128, 128>}, {pipeline_mode = #tpu.pipeline_mode<synchronous>, transform_indices = @transform_2, window_bounds = array<i64: 1, 128>}, {pipeline_mode = #tpu.pipeline_mode<synchronous>, transform_indices = @transform_3, window_bounds = array<i64: 128, 256>}, {pipeline_mode = #tpu.pipeline_mode<synchronous>, transform_indices = @transform_4, window_bounds = array<i64: 1, 256>}, {pipeline_mode = #tpu.pipeline_mode<synchronous>, transform_indices = @transform_5, window_bounds = array<i64: 128, 128>}, {transform_indices = @transform_6, window_bounds = array<i64: 256, 256>}]} {
    %c0 = arith.constant 0 : index
    %c0_0 = arith.constant 0 : index
    %0 = vector.load %arg1[%c0, %c0_0] : memref<256x128xbf16, #tpu.memory_space<vmem>>, vector<256x128xbf16>
    %c0_1 = arith.constant 0 : index
    %c0_2 = arith.constant 0 : index
    %1 = vector.load %arg2[%c0_1, %c0_2] : memref<128x128xbf16, #tpu.memory_space<vmem>>, vector<128x128xbf16>
    %cst = arith.constant dense<0.000000e+00> : vector<256x128xf32>
    %2 = tpu.matmul %0, %1, %cst {dimension_numbers = #tpu.dot_dimension_numbers<[1], [0], [0], [1], [0, 0, 1, 1], [], []>} : vector<256x128xbf16>, vector<128x128xbf16>, vector<256x128xf32> -> vector<256x128xf32>
    %c0_3 = arith.constant 0 : index
    %c0_4 = arith.constant 0 : index
    %3 = vector.load %arg3[%c0_3, %c0_4] : memref<1x128xf32, #tpu.memory_space<vmem>>, vector<1x128xf32>
    %4 = vector.broadcast %3 : vector<1x128xf32> to vector<256x128xf32>
    %5 = arith.addf %2, %4 : vector<256x128xf32>
    %cst_5 = arith.constant 0.000000e+00 : f32
    %6 = vector.broadcast %cst_5 : f32 to vector<256x128xf32>
    %7 = arith.maximumf %5, %6 : vector<256x128xf32>
    %8 = arith.truncf %7 : vector<256x128xf32> to vector<256x128xbf16>
    %c0_6 = arith.constant 0 : index
    %c0_7 = arith.constant 0 : index
    %9 = vector.load %arg4[%c0_6, %c0_7] : memref<128x256xbf16, #tpu.memory_space<vmem>>, vector<128x256xbf16>
    %cst_8 = arith.constant dense<0.000000e+00> : vector<256x256xf32>
    %10 = tpu.matmul %8, %9, %cst_8 {dimension_numbers = #tpu.dot_dimension_numbers<[1], [0], [0], [1], [0, 0, 1, 1], [], []>} : vector<256x128xbf16>, vector<128x256xbf16>, vector<256x256xf32> -> vector<256x256xf32>
    %c0_9 = arith.constant 0 : index
    %c0_10 = arith.constant 0 : index
    %11 = vector.load %arg5[%c0_9, %c0_10] : memref<1x256xf32, #tpu.memory_space<vmem>>, vector<1x256xf32>
    %12 = vector.broadcast %11 : vector<1x256xf32> to vector<256x256xf32>
    %13 = arith.addf %10, %12 : vector<256x256xf32>
    %14 = arith.negf %13 : vector<256x256xf32>
    %15 = math.exp %14 : vector<256x256xf32>
    %cst_11 = arith.constant 1.000000e+00 : f32
    %16 = vector.broadcast %cst_11 : f32 to vector<256x256xf32>
    %17 = arith.addf %16, %15 : vector<256x256xf32>
    %18 = arith.divf %16, %17 : vector<256x256xf32>
    %19 = vector.extract_strided_slice %18 {offsets = [0, 0], sizes = [256, 128], strides = [1, 1]} : vector<256x256xf32> to vector<256x128xf32>
    %20 = vector.extract_strided_slice %18 {offsets = [0, 128], sizes = [256, 128], strides = [1, 1]} : vector<256x256xf32> to vector<256x128xf32>
    %21 = tpu.iota {dimensions = array<i32: 1>} : vector<256x128xi32>
    %c3_i32 = arith.constant 3 : i32
    %22 = vector.broadcast %c3_i32 : i32 to vector<256x128xi32>
    %23 = arith.cmpi slt, %21, %22 : vector<256x128xi32>
    %cst_12 = arith.constant 0.000000e+00 : f32
    %24 = vector.broadcast %cst_12 : f32 to vector<256x128xf32>
    %25 = arith.select %23, %19, %24 : vector<256x128xi1>, vector<256x128xf32>
    %26 = arith.truncf %20 : vector<256x128xf32> to vector<256x128xbf16>
    %c0_13 = arith.constant 0 : index
    %c0_14 = arith.constant 0 : index
    %27 = vector.load %arg6[%c0_13, %c0_14] : memref<128x128xbf16, #tpu.memory_space<vmem>>, vector<128x128xbf16>
    %cst_15 = arith.constant dense<0.000000e+00> : vector<256x128xf32>
    %28 = tpu.matmul %26, %27, %cst_15 {dimension_numbers = #tpu.dot_dimension_numbers<[1], [0], [0], [1], [0, 0, 1, 1], [], []>} : vector<256x128xbf16>, vector<128x128xbf16>, vector<256x128xf32> -> vector<256x128xf32>
    %cst_16 = arith.constant dense<0xFF800000> : vector<256xf32>
    %29 = vector.multi_reduction <maximumf>, %25, %cst_16 [1] : vector<256x128xf32> to vector<256xf32>
    %30 = vector.shape_cast %29 : vector<256xf32> to vector<256x1xf32>
    %31 = vector.broadcast %30 : vector<256x1xf32> to vector<256x128xf32>
    %32 = arith.cmpf oge, %25, %31 : vector<256x128xf32>
    %c128_i32 = arith.constant 128 : i32
    %33 = vector.broadcast %c128_i32 : i32 to vector<256x128xi32>
    %34 = arith.select %32, %21, %33 : vector<256x128xi1>, vector<256x128xi32>
    %cst_17 = arith.constant dense<2147483647> : vector<256xi32>
    %35 = vector.multi_reduction <minsi>, %34, %cst_17 [1] : vector<256x128xi32> to vector<256xi32>
    %36 = vector.shape_cast %35 : vector<256xi32> to vector<256x1xi32>
    %37 = arith.sitofp %36 : vector<256x1xi32> to vector<256x1xf32>
    %38 = vector.shape_cast %30 : vector<256x1xf32> to vector<256x1xf32>
    %39 = vector.broadcast %38 : vector<256x1xf32> to vector<256x128xf32>
    %40 = vector.shape_cast %37 : vector<256x1xf32> to vector<256x1xf32>
    %41 = vector.broadcast %40 : vector<256x1xf32> to vector<256x128xf32>
    %c4_i32 = arith.constant 4 : i32
    %42 = vector.broadcast %c4_i32 : i32 to vector<256x128xi32>
    %43 = arith.cmpi eq, %21, %42 : vector<256x128xi32>
    %44 = arith.select %43, %39, %28 : vector<256x128xi1>, vector<256x128xf32>
    %c5_i32 = arith.constant 5 : i32
    %45 = vector.broadcast %c5_i32 : i32 to vector<256x128xi32>
    %46 = arith.cmpi eq, %21, %45 : vector<256x128xi32>
    %47 = arith.select %46, %41, %44 : vector<256x128xi1>, vector<256x128xf32>
    %c0_18 = arith.constant 0 : index
    %c0_19 = arith.constant 0 : index
    %48 = vector.load %arg7[%c0_18, %c0_19] : memref<256x256xf32, #tpu.memory_space<vmem>>, vector<256x128xf32>
    tpu.vector_store %arg7[%c0_18, %c0_19], %25 {strides = array<i32>} : memref<256x256xf32, #tpu.memory_space<vmem>>, vector<256x128xf32>,
    %c0_20 = arith.constant 0 : index
    %c128 = arith.constant 128 : index
    %49 = vector.load %arg7[%c0_20, %c128] : memref<256x256xf32, #tpu.memory_space<vmem>>, vector<256x128xf32>
    tpu.vector_store %arg7[%c0_20, %c128], %47 {strides = array<i32>} : memref<256x256xf32, #tpu.memory_space<vmem>>, vector<256x128xf32>,
    return
  }
  func.func @transform_0(%arg0: i32) -> (i32, i32) {
    %c0_i32 = arith.constant 0 : i32
    %c0_i32_0 = arith.constant 0 : i32
    return %arg0, %c0_i32 : i32, i32
  }
  func.func @transform_1(%arg0: i32) -> (i32, i32) {
    %c0_i32 = arith.constant 0 : i32
    %c0_i32_0 = arith.constant 0 : i32
    %c0_i32_1 = arith.constant 0 : i32
    return %c0_i32, %c0_i32_0 : i32, i32
  }
  func.func @transform_2(%arg0: i32) -> (i32, i32) {
    %c0_i32 = arith.constant 0 : i32
    %c0_i32_0 = arith.constant 0 : i32
    %c0_i32_1 = arith.constant 0 : i32
    return %c0_i32, %c0_i32_0 : i32, i32
  }
  func.func @transform_3(%arg0: i32) -> (i32, i32) {
    %c0_i32 = arith.constant 0 : i32
    %c0_i32_0 = arith.constant 0 : i32
    %c0_i32_1 = arith.constant 0 : i32
    return %c0_i32, %c0_i32_0 : i32, i32
  }
  func.func @transform_4(%arg0: i32) -> (i32, i32) {
    %c0_i32 = arith.constant 0 : i32
    %c0_i32_0 = arith.constant 0 : i32
    %c0_i32_1 = arith.constant 0 : i32
    return %c0_i32, %c0_i32_0 : i32, i32
  }
  func.func @transform_5(%arg0: i32) -> (i32, i32) {
    %c0_i32 = arith.constant 0 : i32
    %c0_i32_0 = arith.constant 0 : i32
    %c0_i32_1 = arith.constant 0 : i32
    return %c0_i32, %c0_i32_0 : i32, i32
  }
  func.func @transform_6(%arg0: i32) -> (i32, i32) {
    %c0_i32 = arith.constant 0 : i32
    %c0_i32_0 = arith.constant 0 : i32
    return %arg0, %c0_i32 : i32, i32
  }
}

</mosaic_0001>

<bundles_post_ra>
// kernel: tpu_custom_call.1
= control target key start
LH: loop header
LB: loop body
LE: loop exit
PB: predicated region body
PF: predicated region fallthrough
CT: control target
= control target key end

     0   :  { %s4920_s0 = inlined_call_operand.hbm [shape: bf16[512,128], index: 0, kind: input, shape index: {}]   ;;  %s4921_s1 = inlined_call_operand.hbm [shape: bf16[128,128], index: 1, kind: input, shape index: {}]   ;;  %s4922_s2 = inlined_call_operand.vmem [shape: f32[1,128], index: 2, kind: input, shape index: {}]   ;;  %s4923_s3 = inlined_call_operand.hbm [shape: bf16[128,256], index: 3, kind: input, shape index: {}]   ;;  %s4924_s4 = inlined_call_operand.vmem [shape: f32[1,256], index: 4, kind: input, shape index: {}]   ;;  %s4925_s5 = inlined_call_operand.hbm [shape: bf16[128,128], index: 5, kind: input, shape index: {}]   ;;  %s4926_s6 = inlined_call_operand.hbm [shape: f32[512,256], index: 6, kind: output, shape index: {}]  }
   0x1   :  { %4979 = sst [smem:[#allocation76_spill]] %s4921_s1 }
   0x2   :  { %11 = vsyncpa [#allocation3], 0 }
   0x3   :  { %13 = vsyncpa [#allocation3 + $0x1], 0 }
   0x4   :  { %14 = vsyncpa [#allocation6], 0 }
   0x5   :  { %15 = vsyncpa [#allocation9], 0 }
   0x6   :  { %16 = vsyncpa [#allocation4], 0 }
   0x7   :  { %18 = vsyncpa [#allocation4 + $0x1], 0  ;;  %s3459_s21 = smov 0   ;;  %s3461_s22 = smov 0  }
   0x8   :  { %s3463_s23 = smov 0   ;;  %s3465_s24 = smov 0  }
   0x9 LB: > { %s3480_s25 = sadd.s32 4294967295, %s3410_s24   ;;  %s2541_s26 = sadd.s32 4294967294, %s3410_s24   ;;  %s3410_s24 = sphi %s3465_s24, %s5124_s24   ;;  %s3406_s23 = sphi %s3463_s23, %s5123_s23   ;;  %s3402_s22 = sphi %s3461_s22, %s5122_s22   ;;  %s3398_s21 = sphi %s3459_s21, %s5121_s21  }
   0xa   : > { %p44_p0 = scmp.ne.s32.totalorder %s3402_s22, %s3398_s21  ;;  %p4927_p1 = scmp.eq.s32.totalorder %s3480_s25, 0 }
   0xb   : > { %p179_p3 = scmp.eq.s32.totalorder %s2541_s26, 1  ;;  %p2542_p5 = scmp.ge.s32.totalorder %s3410_s24, 1 }
   0xc   : > { %p3489_p4 = por %p4927_p1, %p44_p0  ;;  %p186_p7 = scmp.lt.s32.totalorder %s3410_s24, 3 }
   0xd   : > { %p3494_p6 = por %p179_p3, %p44_p0  ;;  %s3412_s30 = smov [#allocation5]  }
   0xe   : > { %s4980_s27 = scalar_select %p3489_p4, 1, 0 }
   0xf   : > { %s4981_s28 = scalar_select %p3494_p6, 1, 0 }
  0x10   : > { %p3499_p8 = pnand %p2542_p5, %p186_p7  ;;  %s198_s7 = sshll.u32 %s3412_s30, 4  ;;  %s3503_s7 = int_to_ptr.vmem [resolvable:$true] %s198_s7 }
  0x11   : > { %s3413_s9 = smov [#allocation7]   ;;  %s4984_s1 = sld [smem:[#allocation76_spill]] }
  0x12   : > { %s4982_s29 = scalar_select %p3499_p8, 1, 0 }
  0x13   : > { %p2838_p9 = pneg %p3499_p8  ;;  %s214_s10 = sshll.u32 %s3413_s9, 4  ;;  %s3514_s10 = int_to_ptr.vmem [resolvable:$true] %s214_s10 }
  0x15   : > { %p3510_p11 = pnand %p2838_p9, %p4927_p1 }
  0x17   : > { %s3222_s13 = scalar_lea.hbm %s4984_s1, 1024  ;;  %p3524_p13 = pneg %p3510_p11 }
  0x18   : > { %p3223_p12 = scmp.ne.s32.totalorder %s4984_s1, %s3222_s13  ;;  %p3229_p5 = scmp.lt.u32.totalorder %s3222_s13, %s4984_s1 }
  0x1a   : > { %p3225_p0 = pnand %p3524_p13, %p3223_p12 }
  0x1c   : > { %p3226_p3 = pneg %p3225_p0 }
  0x1e   : > { %p3231_p7 = pnand %p3229_p5, %p3226_p3 }
  0x20   : > { %3234 = shalt.err (!%p3231_p7)
}
  0x21   : > { %s3235_s19 = scalar_lea.vmem %s3503_s7, 1024  ;;  %p3243_p2 = scmp.lt.s32.totalorder %s3503_s7, %s3503_s7 }
  0x22   : > { %p3236_p9 = scmp.ne.s32.totalorder %s3503_s7, %s3235_s19  ;;  %p3244_p6 = scmp.lt.s32.totalorder %s3235_s19, %s3235_s19 }
  0x24   : > { %p3238_p10 = pnand %p3236_p9, %p3524_p13  ;;  %p3245_p12 = por %p3244_p6, %p3243_p2 }
  0x26   : > { %p3239_p1 = pneg %p3238_p10 }
  0x28   : > { %p3246_p0 = pnand %p3245_p12, %p3239_p1 }
  0x2a   : > { %3249 = shalt.err (!%p3246_p0)
}
  0x2b   : > { %s4928_s20 = smov 64   ;;  %s4930_s26 = smov 4  }
  0x2c   : > { %2841 = dma.hbm_to_vmem [thread:$0]  (!%p3510_p11), %s4984_s1, 1024, %s3503_s7, [#allocation6], %s4928_s20, %s4928_s20, %s4930_s26  }
  0x2d   : > { %s3250_s13 = scalar_lea.hbm %s4923_s3, 2048 }
  0x2e   : > { %p3251_p1 = scmp.ne.s32.totalorder %s4923_s3, %s3250_s13  ;;  %p3257_p10 = scmp.lt.u32.totalorder %s3250_s13, %s4923_s3 }
  0x30   : > { %p3253_p2 = pnand %p3251_p1, %p3524_p13 }
  0x32   : > { %p3254_p6 = pneg %p3253_p2 }
  0x34   : > { %p3259_p3 = pnand %p3257_p10, %p3254_p6 }
  0x36   : > { %3262 = shalt.err (!%p3259_p3)
}
  0x37   : > { %s3263_s7 = scalar_lea.vmem %s3514_s10, 2048  ;;  %p3271_p12 = scmp.lt.s32.totalorder %s3514_s10, %s3514_s10 }
  0x38   : > { %p3264_p5 = scmp.ne.s32.totalorder %s3514_s10, %s3263_s7  ;;  %p3272_p0 = scmp.lt.s32.totalorder %s3263_s7, %s3263_s7 }
  0x3a   : > { %p3266_p7 = pnand %p3264_p5, %p3524_p13  ;;  %p3273_p1 = por %p3272_p0, %p3271_p12 }
  0x3c   : > { %p3267_p9 = pneg %p3266_p7 }
  0x3e   : > { %p3274_p2 = pnand %p3273_p1, %p3267_p9 }
  0x40   : > { %3277 = shalt.err (!%p3274_p2)
}
  0x41   : > { %s3416_s19 = smov 128   ;;  %s3417_s30 = smov 8  }
  0x42   : > { %2844 = dma.hbm_to_vmem [thread:$0]  (!%p3510_p11), %s4923_s3, 2048, %s3514_s10, [#allocation6], %s3416_s19, %s3416_s19, %s3417_s30  }
  0x43   : > { %s3418_s12 = smov [#allocation8]   ;;  %s3572_s14 = sadd.s32 1, %s3410_s24  }
  0x44   : > { %s230_s13 = sshll.u32 %s3418_s12, 4  ;;  %s3278_s18 = scalar_lea.hbm %s4925_s5, 1024  ;;  %s231_s13 = int_to_ptr.vmem [resolvable:$true] %s230_s13 }
  0x45   : > { %p3279_p6 = scmp.ne.s32.totalorder %s4925_s5, %s3278_s18  ;;  %p3285_p5 = scmp.lt.u32.totalorder %s3278_s18, %s4925_s5 }
  0x47   : > { %p3281_p10 = pnand %p3279_p6, %p3524_p13 }
  0x49   : > { %p3282_p3 = pneg %p3281_p10 }
  0x4b   : > { %p3287_p7 = pnand %p3285_p5, %p3282_p3 }
  0x4d   : > { %3290 = shalt.err (!%p3287_p7)
}
  0x4e   : > { %s3291_s10 = scalar_lea.vmem %s231_s13, 1024  ;;  %p3299_p1 = scmp.lt.s32.totalorder %s231_s13, %s231_s13 }
  0x4f   : > { %p3292_p9 = scmp.ne.s32.totalorder %s231_s13, %s3291_s10  ;;  %p3300_p2 = scmp.lt.s32.totalorder %s3291_s10, %s3291_s10 }
  0x51   : > { %p3294_p12 = pnand %p3292_p9, %p3524_p13  ;;  %p3301_p4 = por %p3300_p2, %p3299_p1 }
  0x53   : > { %p3295_p0 = pneg %p3294_p12 }
  0x55   : > { %p3302_p8 = pnand %p3301_p4, %p3295_p0 }
  0x57   : > { %3305 = shalt.err (!%p3302_p8)
}
  0x58   : > { %s4986_s20 = smov 4   ;;  %s4987_s19 = smov 64  }
  0x59   : > { %2847 = dma.hbm_to_vmem [thread:$0]  (!%p3510_p11), %s4925_s5, 1024, %s231_s13, [#allocation9], %s4987_s19, %s4987_s19, %s4986_s20  }
  0x5a   : > { %s28_s16 = ssub.s32 %s3410_s24, %s3572_s14  ;;  %s31_s8 = sadd.s32 1, %s3406_s23 }
  0x5b   : > { %p29_p4 = scmp.eq.s32.totalorder %s28_s16, 0  ;;  %p38_p8 = scmp.ne.s32.totalorder %s3406_s23, %s3402_s22 }
  0x5c   : > { %p39_p13 = scmp.eq.s32.totalorder %s3410_s24, 0  ;;  %p2859_p6 = scmp.lt.s32.totalorder %s3410_s24, 2 }
  0x5d   : > { %s3603_s30 = scalar_select %p29_p4, %s3406_s23, %s31_s8  }
  0x5e   : > { %p40_p10 = por %p39_p13, %p38_p8  ;;  %p4988_p3 = scmp.eq.s32.totalorder %s3480_s25, 1 }
  0x5f   : > { %s244_s11 = sand.u32 1, %s3406_s23   ;;  %s2675_s12 = sshll.u32 %s3410_s24, 11 }
  0x60   : > { %p3607_p5 = por %p4988_p3, %p38_p8  ;;  %s2547_s15 = sshll.u32 %s244_s11, 7 }
  0x61   : > { %s3616_s13 = scalar_lea.hbm %s4920_s0, %s2675_s12  ;;  %s248_s7 = scalar_lea.vmem [#allocation2], %s2547_s15 }
  0x62   : > { %s255_s10 = sshll.u32 %s248_s7, 4  ;;  %p3618_p11 = pnand %p2859_p6, %p40_p10  ;;  %s3622_s10 = int_to_ptr.vmem [resolvable:$true] %s255_s10 }
  0x63   : > { %s3624_s26 = scalar_lea.sflag [#allocation3], %s244_s11  ;;  %s3306_s16 = scalar_lea.hbm %s3616_s13, 2048 }
  0x64   : > { %p3307_p7 = scmp.ne.s32.totalorder %s3616_s13, %s3306_s16  ;;  %p3308_p9 = pneg %p3618_p11 }
  0x65   : > { %s3311_s15 = scalar_lea.hbm %s4920_s0, 4096  ;;  %p3312_p1 = scmp.lt.u32.totalorder %s3616_s13, %s4920_s0 }
  0x66   : > { %p3309_p12 = pnand %p3308_p9, %p3307_p7  ;;  %p3313_p2 = scmp.lt.u32.totalorder %s3311_s15, %s3306_s16 }
  0x67   : > { %p3315_p8 = scmp.lt.u32.totalorder %s3306_s16, %s3616_s13 }
  0x68   : > { %p3310_p0 = pneg %p3309_p12  ;;  %p3314_p4 = por %p3313_p2, %p3312_p1 }
  0x6a   : > { %p3316_p13 = por %p3315_p8, %p3314_p4 }
  0x6c   : > { %p3317_p6 = pnand %p3316_p13, %p3310_p0 }
  0x6e   : > { %3320 = shalt.err (!%p3317_p6)
}
  0x6f   : > { %s3321_s11 = scalar_lea.vmem %s3622_s10, 2048  ;;  %s3419_s7 = smov [#allocation2]  }
  0x70   : > { %p3322_p10 = scmp.ne.s32.totalorder %s3622_s10, %s3321_s11  ;;  %s3326_s8 = sshll.u32 %s3419_s7, 4  ;;  %s3327_s8 = int_to_ptr.vmem [resolvable:$false] %s3326_s8 }
  0x71   : > { %s3328_s12 = scalar_lea.vmem %s3327_s8, 4096  ;;  %p3329_p12 = scmp.lt.s32.totalorder %s3622_s10, %s3327_s8 }
  0x72   : > { %p3324_p3 = pnand %p3322_p10, %p3308_p9  ;;  %p3330_p1 = scmp.lt.s32.totalorder %s3328_s12, %s3321_s11 }
  0x74   : > { %p3325_p7 = pneg %p3324_p3  ;;  %p3331_p2 = por %p3330_p1, %p3329_p12 }
  0x76   : > { %p3332_p4 = pnand %p3331_p2, %p3325_p7 }
  0x78   : > { %3335 = shalt.err (!%p3332_p4)
}
  0x79   : > { %2851 = dma.hbm_to_vmem [thread:$0]  (!%p3618_p11), %s3616_s13, 2048, %s3622_s10, %s3624_s26, %s4987_s19, %s4987_s19, %s4986_s20  }
  0x7a   : > { %p4991_p9 = scmp.ne.s32.totalorder %s4982_s29, 0 }
  0x7c   : > { %267 = sbr.rel (%p4991_p9) target bundleno = 1220 (0x4c4), region = 44 }
  0x83   : > { %s3658_s16 = sand.u32 1, %s3402_s22   ;;  %p4992_p0 = scmp.ne.s32.totalorder %s4980_s27, 0 }
  0x84   : > { %s2551_s15 = sshll.u32 %s3658_s16, 7  ;;  %s270_s17 = scalar_lea.sflag [#allocation3], %s3658_s16 }
  0x85   : > { %s3662_s18 = scalar_lea.vmem [#allocation2], %s2551_s15 }
  0x86   : > { %3381 = dma.done.wait (%p4992_p0), %s270_s17, 2048  }
  0x87   : > { %3383 = vsyncadd (%p4992_p0), %s270_s17, 4294965248  ;;  %p4993_p11 = scmp.eq.s32.totalorder %s3480_s25, 0 }
  0x89   : > { %3385 = dma.done.wait (%p4993_p11), [#allocation6], 3072   ;;  %p4994_p8 = pmov %p4993_p11 }
  0x8b   : > { %3387 = vsyncadd (%p4994_p8), [#allocation6], 4294964224  ;;  %p4995_p13 = pmov %p4994_p8 }
  0x8c   : > { %p4996_p6 = pmov %p4994_p8 }
  0x8d   : > { %3389 = dma.done.wait (%p4995_p13), [#allocation9], 1024  }
  0x8e   : > { %3391 = vsyncadd (%p4996_p6), [#allocation9], 4294966272  ;;  %v2906_v0 = vld [vmem:[#allocation5] sm:$0xff]   ;;  %v2907_v1 = vld [vmem:[#allocation5 + $0x8] sm:$0xff]   ;;  %v3420_v40 = vmov 0   ;;  %s2555_s13 = sshll.u32 %s3658_s16, 9 }
  0x8f   : > { %2726 = vmatprep.subr.bf16.mxu0 %v2906_v0  ;;  %v2908_v2 = vld [vmem:[#allocation5 + $0x10] sm:$0xff]   ;;  %v2909_v3 = vld [vmem:[#allocation5 + $0x18] sm:$0xff]   ;;  %v2914_v4 = vld [vmem:[%s3662_s18] sm:$0xff]   ;;  %865 = vmatprep.mubr.bf16.mxu1 %v3420_v40  ;;  %s3779_s10 = scalar_lea.vmem [#allocation10], %s2555_s13  ;;  %s2677_s1 = sshll.u32 %s3480_s25, 13 }
  0x90   : > { %2727 = vmatpush3.bf16.msra.mxu0 %v2906_v0  ;;  %2742 = vmatprep.mubr.bf16.mxu0 %v2914_v4  ;;  %v2910_v5 = vld [vmem:[#allocation5 + $0x20] sm:$0xff]   ;;  %v2911_v6 = vld [vmem:[#allocation5 + $0x28] sm:$0xff]   ;;  %v2912_v7 = vld [vmem:[#allocation5 + $0x30] sm:$0xff]   ;;  %s2439_s26 = sshll.u32 %s3779_s10, 4  ;;  %s4867_s8 = scalar_lea.hbm %s4926_s6, %s2677_s1  ;;  %s4869_s26 = int_to_ptr.vmem [resolvable:$true] %s2439_s26 }
  0x91   : > { %2728 = vmatprep.subr.bf16.mxu0 %v2907_v1  ;;  %v2913_v8 = vld [vmem:[#allocation5 + $0x38] sm:$0xff]   ;;  %v2930_v9 = vld [vmem:[#allocation7 + $0x4] ss:$8 sps:$4 sm:$0xff]   ;;  %v2932_v10 = vld [vmem:[#allocation7] ss:$8 sps:$4 sm:$0xff]   ;;  %s2425_s25 = scalar_lea.sflag [#allocation4], %s3658_s16 }
  0x92   : > { %833 = vmatprep.subr.bf16.mxu1 %v2930_v9  ;;  %v2933_v11 = vld [vmem:[#allocation7 + $0x14] ss:$8 sps:$4 sm:$0xff]   ;;  %v2935_v12 = vld [vmem:[#allocation7 + $0x10] ss:$8 sps:$4 sm:$0xff]   ;;  %v2936_v13 = vld [vmem:[#allocation7 + $0x24] ss:$8 sps:$4 sm:$0xff]  }
  0x93   : > { %834 = vmatpush1.bf16.msra.mxu1 %v2932_v10  ;;  %v2915_v14 = vld [vmem:[%s3662_s18 + $0x8] sm:$0xff]   ;;  %v2916_v15 = vld [vmem:[%s3662_s18 + $0x10] sm:$0xff]   ;;  %v2917_v20 = vld [vmem:[%s3662_s18 + $0x18] sm:$0xff]   ;;  %s3336_s12 = scalar_lea.vmem %s4869_s26, 8192  ;;  %s3421_s15 = smov [#allocation10]  }
  0x94   : > { %2729 = vmatpush3.bf16.msra.mxu0 %v2907_v1  ;;  %835 = vmatprep.subr.bf16.mxu1 %v2933_v11  ;;  %v2938_v16 = vld [vmem:[#allocation7 + $0x20] ss:$8 sps:$4 sm:$0xff]   ;;  %v2939_v17 = vld [vmem:[#allocation7 + $0x34] ss:$8 sps:$4 sm:$0xff]   ;;  %v2941_v18 = vld [vmem:[#allocation7 + $0x30] ss:$8 sps:$4 sm:$0xff]   ;;  %p3337_p10 = scmp.ne.s32.totalorder %s4869_s26, %s3336_s12 }
  0x95   : > { %2730 = vmatprep.subr.bf16.mxu0 %v2908_v2  ;;  %v2942_v19 = vld [vmem:[#allocation7 + $0x44] ss:$8 sps:$4 sm:$0xff]   ;;  %v2944_v22 = vld [vmem:[#allocation7 + $0x40] ss:$8 sps:$4 sm:$0xff]   ;;  %v2945_v23 = vld [vmem:[#allocation7 + $0x54] ss:$8 sps:$4 sm:$0xff]  }
  0x96   : > { %v2918_v21 = vld [vmem:[%s3662_s18 + $0x20] sm:$0xff]   ;;  %v2947_v24 = vld [vmem:[#allocation7 + $0x50] ss:$8 sps:$4 sm:$0xff]   ;;  %v2919_v25 = vld [vmem:[%s3662_s18 + $0x28] sm:$0xff]   ;;  %p3338_p3 = pnand %p3337_p10, %p3607_p5  ;;  %s3340_s17 = sshll.u32 %s3421_s15, 4  ;;  %s3341_s17 = int_to_ptr.vmem [resolvable:$false] %s3340_s17 }
  0x97   : > { %836 = vmatpush1.bf16.msra.mxu1 %v2935_v12  ;;  %v2920_v26 = vld [vmem:[%s3662_s18 + $0x30] sm:$0xff]   ;;  %v2921_v27 = vld [vmem:[%s3662_s18 + $0x38] sm:$0xff]   ;;  %v2922_v28 = vld [vmem:[%s3662_s18 + $0x40] sm:$0xff]   ;;  %p3343_p12 = scmp.lt.s32.totalorder %s4869_s26, %s3341_s17 }
  0x98   : > { %2731 = vmatpush3.bf16.msra.mxu0 %v2908_v2  ;;  %837 = vmatprep.subr.bf16.mxu1 %v2936_v13  ;;  %v2923_v29 = vld [vmem:[%s3662_s18 + $0x48] sm:$0xff]   ;;  %v2924_v30 = vld [vmem:[%s3662_s18 + $0x50] sm:$0xff]   ;;  %v2925_v31 = vld [vmem:[%s3662_s18 + $0x58] sm:$0xff]   ;;  %p3339_p7 = pneg %p3338_p3 }
  0x99   : > { %2732 = vmatprep.subr.bf16.mxu0 %v2909_v3  ;;  %v2926_v32 = vld [vmem:[%s3662_s18 + $0x60] sm:$0xff]   ;;  %v2927_v33 = vld [vmem:[%s3662_s18 + $0x68] sm:$0xff]   ;;  %v2928_v34 = vld [vmem:[%s3662_s18 + $0x70] sm:$0xff]  }
  0x9a   : > { %v2929_v35 = vld [vmem:[%s3662_s18 + $0x78] sm:$0xff]   ;;  %v2948_v36 = vld [vmem:[#allocation7 + $0x64] ss:$8 sps:$4 sm:$0xff]   ;;  %v2950_v37 = vld [vmem:[#allocation7 + $0x60] ss:$8 sps:$4 sm:$0xff]   ;;  %s3342_s18 = scalar_lea.vmem %s3341_s17, 16384 }
  0x9b   : > { %838 = vmatpush1.bf16.msra.mxu1 %v2938_v16  ;;  %v2951_v38 = vld [vmem:[#allocation7 + $0x74] ss:$8 sps:$4 sm:$0xff]   ;;  %v2953_v39 = vld [vmem:[#allocation7 + $0x70] ss:$8 sps:$4 sm:$0xff]   ;;  %v3696_v41 = vld [vmem:[%s4922_s2] ss:$0 sm:$0xff]  ;;  %p3344_p1 = scmp.lt.s32.totalorder %s3342_s18, %s3336_s12 }
  0x9c   : > { %2733 = vmatpush3.bf16.msra.mxu0 %v2909_v3  ;;  %839 = vmatprep.subr.bf16.mxu1 %v2939_v17 }
  0x9d   : > { %2734 = vmatprep.subr.bf16.mxu0 %v2910_v5  ;;  %p3345_p2 = por %p3344_p1, %p3343_p12 }
  0x9f   : > { %840 = vmatpush1.bf16.msra.mxu1 %v2941_v18  ;;  %p3346_p4 = pnand %p3345_p2, %p3339_p7 }
  0xa0   : > { %2735 = vmatpush3.bf16.msra.mxu0 %v2910_v5  ;;  %841 = vmatprep.subr.bf16.mxu1 %v2942_v19 }
  0xa1   : > { %2736 = vmatprep.subr.bf16.mxu0 %v2911_v6 }
  0xa3   : > { %842 = vmatpush1.bf16.msra.mxu1 %v2944_v22 }
  0xa4   : > { %2737 = vmatpush3.bf16.msra.mxu0 %v2911_v6  ;;  %843 = vmatprep.subr.bf16.mxu1 %v2945_v23 }
  0xa5   : > { %2738 = vmatprep.subr.bf16.mxu0 %v2912_v7 }
  0xa7   : > { %844 = vmatpush1.bf16.msra.mxu1 %v2947_v24 }
  0xa8   : > { %2739 = vmatpush3.bf16.msra.mxu0 %v2912_v7  ;;  %845 = vmatprep.subr.bf16.mxu1 %v2948_v36 }
  0xa9   : > { %2740 = vmatprep.subr.bf16.mxu0 %v2913_v8 }
  0xab   : > { %846 = vmatpush1.bf16.msra.mxu1 %v2950_v37 }
  0xac   : > { %2741 = vmatpush3.bf16.msra.mxu0 %v2913_v8  ;;  %847 = vmatprep.subr.bf16.mxu1 %v2951_v38 }
  0xaf   : > { %2743 = vmatmul.mubr.bf16.vlgmr.msra.gmra.mrb[0].mxu0 %v2915_v14  ;;  %848 = vmatpush1.bf16.msra.mxu1 %v2953_v39 }
  0xb0   : > { %2746 = vmatprep.mubr.bf16.mxu0 %v2916_v15 }
  0xb7   : > { %2747 = vmatmul.mubr.bf16.gmra.mrb[4].mxu0 %v2917_v20 }
  0xb8   : > { %2750 = vmatprep.mubr.bf16.mxu0 %v2918_v21 }
  0xbf   : > { %2751 = vmatmul.mubr.bf16.gmra.mrb[8].mxu0 %v2919_v25 }
  0xc0   : > { %2754 = vmatprep.mubr.bf16.mxu0 %v2920_v26 }
  0xc7   : > { %2755 = vmatmul.mubr.bf16.gmra.mrb[12].mxu0 %v2921_v27 }
  0xc8   : > { %2758 = vmatprep.mubr.bf16.mxu0 %v2922_v28 }
  0xcf   : > { %2759 = vmatmul.mubr.bf16.gmra.mrb[16].mxu0 %v2923_v29 }
  0xd0   : > { %2762 = vmatprep.mubr.bf16.mxu0 %v2924_v30 }
  0xd7   : > { %2763 = vmatmul.mubr.bf16.gmra.mrb[20].mxu0 %v2925_v31 }
  0xd8   : > { %2766 = vmatprep.mubr.bf16.mxu0 %v2926_v32 }
  0xdf   : > { %2767 = vmatmul.mubr.bf16.gmra.mrb[24].mxu0 %v2927_v33 }
  0xe0   : > { %2770 = vmatprep.mubr.bf16.mxu0 %v2928_v34 }
  0xe7   : > { %2771 = vmatmul.mubr.bf16.gmra.mrb[28].mxu0 %v2929_v35 }
 0x182   : > { %v2744_v42 = vpop.f32.mrb[0].mxu0 }
 0x183   : > { %v559_v43 = vadd.f32 %v2744_v42, %v3696_v41  ;;  %v550_v44 = vpop.f32.mrb[1].mxu0 }
 0x184   : > { %v551_v45 = vadd.f32 %v3696_v41, %v550_v44  ;;  %v2745_v46 = vpop.f32.mrb[2].mxu0 }
 0x185   : > { %v562_v47 = vadd.f32 %v2745_v46, %v3696_v41  ;;  %v553_v48 = vpop.f32.mrb[3].mxu0  ;;  %v679_v50 = vmax.f32 %v559_v43, 0.0 }
 0x186   : > { %v554_v49 = vadd.f32 %v3696_v41, %v553_v48  ;;  %v677_v52 = vmax.f32 %v551_v45, 0.0 }
 0x187   : > { %v680_v51 = vmax.f32 %v562_v47, 0.0 }
 0x188   : > { %v678_v53 = vmax.f32 %v554_v49, 0.0 }
 0x189   : > { %v710_v54 = vpack.c.bf16 %v680_v51, %v679_v50 }
 0x18a   : > { %v709_v55 = vpack.c.bf16 %v678_v53, %v677_v52  ;;  %v2748_v56 = vpop.f32.mrb[4].mxu0 }
 0x18b   : > { %v575_v57 = vadd.f32 %v2748_v56, %v3696_v41  ;;  %v566_v58 = vpop.f32.mrb[5].mxu0 }
 0x18c   : > { %866 = vmatmul.mubr.bf16.vlgmr.msra.gmra.mrb[0].mxu1 %v709_v55  ;;  %v567_v59 = vadd.f32 %v3696_v41, %v566_v58  ;;  %v2749_v60 = vpop.f32.mrb[6].mxu0 }
 0x18d   : > { %v683_v61 = vmax.f32 %v575_v57, 0.0  ;;  %v578_v62 = vadd.f32 %v2749_v60, %v3696_v41  ;;  %v569_v63 = vpop.f32.mrb[7].mxu0  ;;  %875 = vmatprep.mubr.bf16.mxu1 %v3420_v40 }
 0x18e   : > { %v681_v0 = vmax.f32 %v567_v59, 0.0  ;;  %v570_v1 = vadd.f32 %v3696_v41, %v569_v63 }
 0x18f   : > { %v684_v2 = vmax.f32 %v578_v62, 0.0 }
 0x190   : > { %v682_v3 = vmax.f32 %v570_v1, 0.0 }
 0x191   : > { %v712_v4 = vpack.c.bf16 %v684_v2, %v683_v61 }
 0x192   : > { %v711_v5 = vpack.c.bf16 %v682_v3, %v681_v0  ;;  %v2752_v6 = vpop.f32.mrb[8].mxu0 }
 0x193   : > { %v591_v7 = vadd.f32 %v2752_v6, %v3696_v41  ;;  %v582_v8 = vpop.f32.mrb[9].mxu0 }
 0x194   : > { %876 = vmatmul.mubr.bf16.gmra.mrb[4].mxu1 %v710_v54  ;;  %v583_v9 = vadd.f32 %v3696_v41, %v582_v8  ;;  %v2753_v10 = vpop.f32.mrb[10].mxu0 }
 0x195   : > { %885 = vmatprep.mubr.bf16.mxu1 %v3420_v40  ;;  %v687_v11 = vmax.f32 %v591_v7, 0.0  ;;  %v594_v12 = vadd.f32 %v2753_v10, %v3696_v41  ;;  %v585_v13 = vpop.f32.mrb[11].mxu0 }
 0x196   : > { %v685_v14 = vmax.f32 %v583_v9, 0.0  ;;  %v586_v15 = vadd.f32 %v3696_v41, %v585_v13 }
 0x197   : > { %v688_v16 = vmax.f32 %v594_v12, 0.0 }
 0x198   : > { %v686_v17 = vmax.f32 %v586_v15, 0.0 }
 0x199   : > { %v714_v18 = vpack.c.bf16 %v688_v16, %v687_v11 }
 0x19a   : > { %v713_v19 = vpack.c.bf16 %v686_v17, %v685_v14  ;;  %v2756_v20 = vpop.f32.mrb[12].mxu0 }
 0x19b   : > { %v607_v21 = vadd.f32 %v2756_v20, %v3696_v41  ;;  %v598_v22 = vpop.f32.mrb[13].mxu0 }
 0x19c   : > { %886 = vmatmul.mubr.bf16.gmra.mrb[8].mxu1 %v711_v5  ;;  %v599_v23 = vadd.f32 %v3696_v41, %v598_v22  ;;  %v2757_v24 = vpop.f32.mrb[14].mxu0 }
 0x19d   : > { %895 = vmatprep.mubr.bf16.mxu1 %v3420_v40  ;;  %v691_v25 = vmax.f32 %v607_v21, 0.0  ;;  %v610_v26 = vadd.f32 %v2757_v24, %v3696_v41  ;;  %v601_v27 = vpop.f32.mrb[15].mxu0 }
 0x19e   : > { %v689_v28 = vmax.f32 %v599_v23, 0.0  ;;  %v602_v29 = vadd.f32 %v3696_v41, %v601_v27 }
 0x19f   : > { %v692_v30 = vmax.f32 %v610_v26, 0.0 }
 0x1a0   : > { %v690_v31 = vmax.f32 %v602_v29, 0.0  ;;  %v2956_v29 = vld [vmem:[#allocation8 + $0x10] sm:$0xff]  }
 0x1a1   : > { %v3717_v32 = vpack.c.bf16 %v692_v30, %v691_v25  ;;  %v2957_v30 = vld [vmem:[#allocation8 + $0x18] sm:$0xff]  }
 0x1a2   : > { %v715_v33 = vpack.c.bf16 %v690_v31, %v689_v28  ;;  %v2760_v34 = vpop.f32.mrb[16].mxu0  ;;  %v2955_v28 = vld [vmem:[#allocation8 + $0x8] sm:$0xff]   ;;  %v2958_v31 = vld [vmem:[#allocation8 + $0x20] sm:$0xff]  }
 0x1a3   : > { %v623_v35 = vadd.f32 %v2760_v34, %v3696_v41  ;;  %v614_v36 = vpop.f32.mrb[17].mxu0  ;;  %v2961_v34 = vld [vmem:[#allocation8 + $0x38] sm:$0xff]  }
 0x1a4   : > { %896 = vmatmul.mubr.bf16.gmra.mrb[12].mxu1 %v712_v4  ;;  %v615_v37 = vadd.f32 %v3696_v41, %v614_v36  ;;  %v2761_v38 = vpop.f32.mrb[18].mxu0 }
 0x1a5   : > { %905 = vmatprep.mubr.bf16.mxu1 %v3420_v40  ;;  %v695_v39 = vmax.f32 %v623_v35, 0.0  ;;  %v626_v42 = vadd.f32 %v2761_v38, %v3696_v41  ;;  %v617_v43 = vpop.f32.mrb[19].mxu0  ;;  %v743_v35 = vlaneseq  ;;  %v741_v38 = vld [vmem:[%s4924_s4] sm:$0x3] }
 0x1a6   : > { %v693_v44 = vmax.f32 %v615_v37, 0.0  ;;  %v618_v45 = vadd.f32 %v3696_v41, %v617_v43 }
 0x1a7   : > { %v696_v46 = vmax.f32 %v626_v42, 0.0  ;;  %v744_v36 = vshrl.u32 %v743_v35, 7 }
 0x1a8   : > { %v694_v47 = vmax.f32 %v618_v45, 0.0 }
 0x1a9   : > { %v718_v48 = vpack.c.bf16 %v696_v46, %v695_v39  ;;  %v745_v37 = vsub.s32 0, %v744_v36  ;;  %v749_v39 = vsub.s32 1, %v744_v36 }
 0x1aa   : > { %v717_v49 = vpack.c.bf16 %v694_v47, %v693_v44  ;;  %v2764_v50 = vpop.f32.mrb[20].mxu0 }
 0x1ab   : > { %v639_v51 = vadd.f32 %v2764_v50, %v3696_v41  ;;  %v630_v52 = vpop.f32.mrb[21].mxu0  ;;  %v3752_v42 = vrot.slane %v741_v38, %v745_v37 }
 0x1ac   : > { %906 = vmatmul.mubr.bf16.gmra.mrb[16].mxu1 %v713_v19  ;;  %v631_v53 = vadd.f32 %v3696_v41, %v630_v52  ;;  %v2765_v54 = vpop.f32.mrb[22].mxu0 }
 0x1ad   : > { %915 = vmatprep.mubr.bf16.mxu1 %v3420_v40  ;;  %v699_v55 = vmax.f32 %v639_v51, 0.0  ;;  %v642_v56 = vadd.f32 %v2765_v54, %v3696_v41  ;;  %v633_v57 = vpop.f32.mrb[23].mxu0 }
 0x1ae   : > { %v697_v58 = vmax.f32 %v631_v53, 0.0  ;;  %v634_v59 = vadd.f32 %v3696_v41, %v633_v57 }
 0x1af   : > { %v700_v60 = vmax.f32 %v642_v56, 0.0 }
 0x1b0   : > { %v698_v61 = vmax.f32 %v634_v59, 0.0 }
 0x1b1   : > { %v720_v62 = vpack.c.bf16 %v700_v60, %v699_v55 }
 0x1b2   : > { %v719_v63 = vpack.c.bf16 %v698_v61, %v697_v58  ;;  %v2768_v0 = vpop.f32.mrb[24].mxu0 }
 0x1b3   : > { %v655_v1 = vadd.f32 %v2768_v0, %v3696_v41  ;;  %v646_v2 = vpop.f32.mrb[25].mxu0 }
 0x1b4   : > { %916 = vmatmul.mubr.bf16.gmra.mrb[20].mxu1 %v714_v18  ;;  %v647_v3 = vadd.f32 %v3696_v41, %v646_v2  ;;  %v2769_v4 = vpop.f32.mrb[26].mxu0 }
 0x1b5   : > { %925 = vmatprep.mubr.bf16.mxu1 %v3420_v40  ;;  %v703_v5 = vmax.f32 %v655_v1, 0.0  ;;  %v658_v6 = vadd.f32 %v2769_v4, %v3696_v41  ;;  %v649_v7 = vpop.f32.mrb[27].mxu0 }
 0x1b6   : > { %v701_v8 = vmax.f32 %v647_v3, 0.0  ;;  %v650_v9 = vadd.f32 %v3696_v41, %v649_v7 }
 0x1b7   : > { %v704_v10 = vmax.f32 %v658_v6, 0.0 }
 0x1b8   : > { %v702_v11 = vmax.f32 %v650_v9, 0.0 }
 0x1b9   : > { %v722_v12 = vpack.c.bf16 %v704_v10, %v703_v5 }
 0x1ba   : > { %v721_v13 = vpack.c.bf16 %v702_v11, %v701_v8  ;;  %v2772_v14 = vpop.f32.mrb[28].mxu0 }
 0x1bb   : > { %v671_v15 = vadd.f32 %v2772_v14, %v3696_v41  ;;  %v662_v16 = vpop.f32.mrb[29].mxu0 }
 0x1bc   : > { %926 = vmatmul.mubr.bf16.gmra.mrb[24].mxu1 %v715_v33  ;;  %v663_v17 = vadd.f32 %v3696_v41, %v662_v16  ;;  %v2773_v18 = vpop.f32.mrb[30].mxu0  ;;  %v2960_v33 = vld [vmem:[#allocation8 + $0x30] sm:$0xff]  }
 0x1bd   : > { %935 = vmatprep.mubr.bf16.mxu1 %v3420_v40  ;;  %v707_v19 = vmax.f32 %v671_v15, 0.0  ;;  %v674_v20 = vadd.f32 %v2773_v18, %v3696_v41  ;;  %v665_v21 = vpop.f32.mrb[31].mxu0 }
 0x1be   : > { %v705_v22 = vmax.f32 %v663_v17, 0.0  ;;  %v666_v23 = vadd.f32 %v3696_v41, %v665_v21  ;;  %v2954_v41 = vld [vmem:[#allocation8] sm:$0xff]  }
 0x1bf   : > { %v708_v24 = vmax.f32 %v674_v20, 0.0  ;;  %2774 = vmatprep.subr.bf16.mxu0 %v2954_v41 }
 0x1c0   : > { %v706_v25 = vmax.f32 %v666_v23, 0.0  ;;  %2775 = vmatpush3.bf16.msra.mxu0 %v2954_v41  ;;  %v3769_v23 = vand.u32 127, %v743_v35 }
 0x1c1   : > { %v724_v26 = vpack.c.bf16 %v708_v24, %v707_v19  ;;  %2776 = vmatprep.subr.bf16.mxu0 %v2955_v28 }
 0x1c2   : > { %v723_v27 = vpack.c.bf16 %v706_v25, %v705_v22  ;;  %4997 = vst [vmem:[#allocation15_spill] sm:$0xff] %v3769_v23  ;;  %vm1412_vm0 = vcmp.lt.s32.totalorder %v3769_v23, 3 }
 0x1c4   : > { %936 = vmatmul.mubr.bf16.gmra.mrb[28].mxu1 %v3717_v32  ;;  %2777 = vmatpush3.bf16.msra.mxu0 %v2955_v28  ;;  %v2959_v32 = vld [vmem:[#allocation8 + $0x28] sm:$0xff]  }
 0x1c5   : > { %945 = vmatprep.mubr.bf16.mxu1 %v3420_v40  ;;  %2778 = vmatprep.subr.bf16.mxu0 %v2956_v29 }
 0x1c8   : > { %2779 = vmatpush3.bf16.msra.mxu0 %v2956_v29 }
 0x1c9   : > { %2780 = vmatprep.subr.bf16.mxu0 %v2957_v30 }
 0x1cc   : > { %946 = vmatmul.mubr.bf16.gmra.mrb[32].mxu1 %v717_v49  ;;  %2781 = vmatpush3.bf16.msra.mxu0 %v2957_v30 }
 0x1cd   : > { %955 = vmatprep.mubr.bf16.mxu1 %v3420_v40  ;;  %2782 = vmatprep.subr.bf16.mxu0 %v2958_v31 }
 0x1d0   : > { %2783 = vmatpush3.bf16.msra.mxu0 %v2958_v31 }
 0x1d1   : > { %2784 = vmatprep.subr.bf16.mxu0 %v2959_v32 }
 0x1d4   : > { %956 = vmatmul.mubr.bf16.gmra.mrb[36].mxu1 %v718_v48  ;;  %2785 = vmatpush3.bf16.msra.mxu0 %v2959_v32 }
 0x1d5   : > { %965 = vmatprep.mubr.bf16.mxu1 %v3420_v40  ;;  %2786 = vmatprep.subr.bf16.mxu0 %v2960_v33 }
 0x1d8   : > { %2787 = vmatpush3.bf16.msra.mxu0 %v2960_v33 }
 0x1d9   : > { %2788 = vmatprep.subr.bf16.mxu0 %v2961_v34 }
 0x1dc   : > { %966 = vmatmul.mubr.bf16.gmra.mrb[40].mxu1 %v719_v63  ;;  %2789 = vmatpush3.bf16.msra.mxu0 %v2961_v34 }
 0x1dd   : > { %975 = vmatprep.mubr.bf16.mxu1 %v3420_v40 }
 0x1e4   : > { %976 = vmatmul.mubr.bf16.gmra.mrb[44].mxu1 %v720_v62 }
 0x1e5   : > { %985 = vmatprep.mubr.bf16.mxu1 %v3420_v40 }
 0x1ec   : > { %986 = vmatmul.mubr.bf16.gmra.mrb[48].mxu1 %v721_v13 }
 0x1ed   : > { %995 = vmatprep.mubr.bf16.mxu1 %v3420_v40 }
 0x1f4   : > { %996 = vmatmul.mubr.bf16.gmra.mrb[52].mxu1 %v722_v12 }
 0x1f5   : > { %1005 = vmatprep.mubr.bf16.mxu1 %v3420_v40 }
 0x1fc   : > { %1006 = vmatmul.mubr.bf16.gmra.mrb[56].mxu1 %v723_v27 }
 0x1fd   : > { %1015 = vmatprep.mubr.bf16.mxu1 %v3420_v40  ;;  %v3754_v40 = vrot.slane %v741_v38, %v749_v39 }
 0x204   : > { %1016 = vmatmul.mubr.bf16.gmra.mrb[60].mxu1 %v724_v26 }
 0x25f   : > { %v867_v43 = vpop.f32.mrb[0].mxu1 }
 0x260   : > { %v868_v44 = vadd.f32 %v867_v43, %v3752_v42  ;;  %v869_v45 = vpop.f32.mrb[1].mxu1 }
 0x261   : > { %v870_v46 = vadd.f32 %v869_v45, %v3754_v40  ;;  %v871_v47 = vpop.f32.mrb[2].mxu1 }
 0x262   : > { %v2597_v48 = vmul.f32 -1.442695, %v868_v44  ;;  %v872_v49 = vadd.f32 %v871_v47, %v3752_v42  ;;  %v873_v50 = vpop.f32.mrb[3].mxu1 }
 0x263   : > { %v2598_v51 = vmul.f32 -1.442695, %v870_v46  ;;  %v874_v52 = vadd.f32 %v873_v50, %v3754_v40 }
 0x264   : > { %2962 = vpow2.f32 %v2597_v48  ;;  %v2599_v53 = vmul.f32 -1.442695, %v872_v49 }
 0x265   : > { %2964 = vpow2.f32 %v2598_v51  ;;  %v2600_v54 = vmul.f32 -1.442695, %v874_v52 }
 0x266   : > { %2966 = vpow2.f32 %v2599_v53 }
 0x267   : > { %2968 = vpow2.f32 %v2600_v54  ;;  %v877_v55 = vpop.f32.mrb[4].mxu1 }
 0x268   : > { %v878_v56 = vadd.f32 %v877_v55, %v3752_v42  ;;  %v879_v57 = vpop.f32.mrb[5].mxu1 }
 0x269   : > { %v880_v58 = vadd.f32 %v879_v57, %v3754_v40  ;;  %v881_v59 = vpop.f32.mrb[6].mxu1 }
 0x26a   : > { %v2601_v60 = vmul.f32 -1.442695, %v878_v56  ;;  %v882_v61 = vadd.f32 %v881_v59, %v3752_v42  ;;  %v883_v62 = vpop.f32.mrb[7].mxu1 }
 0x26b   : > { %v2602_v63 = vmul.f32 -1.442695, %v880_v58  ;;  %v884_v0 = vadd.f32 %v883_v62, %v3754_v40 }
 0x26c   : > { %2970 = vpow2.f32 %v2601_v60  ;;  %v2603_v1 = vmul.f32 -1.442695, %v882_v61 }
 0x26d   : > { %2972 = vpow2.f32 %v2602_v63  ;;  %v2604_v2 = vmul.f32 -1.442695, %v884_v0 }
 0x26e   : > { %v2963_v3 = vpop.eup %2962  ;;  %2974 = vpow2.f32 %v2603_v1 }
 0x26f   : > { %v2965_v4 = vpop.eup %2964  ;;  %v1218_v5 = vadd.f32 1.0, %v2963_v3  ;;  %2976 = vpow2.f32 %v2604_v2  ;;  %v887_v6 = vpop.f32.mrb[8].mxu1 }
 0x270   : > { %v2967_v7 = vpop.eup %2966  ;;  %v1219_v8 = vadd.f32 1.0, %v2965_v4  ;;  %v888_v9 = vadd.f32 %v887_v6, %v3752_v42  ;;  %v889_v10 = vpop.f32.mrb[9].mxu1 }
 0x271   : > { %v2969_v11 = vpop.eup %2968  ;;  %2978 = vrcp.f32 %v1218_v5  ;;  %v1220_v12 = vadd.f32 1.0, %v2967_v7  ;;  %v890_v13 = vadd.f32 %v889_v10, %v3754_v40  ;;  %v891_v14 = vpop.f32.mrb[10].mxu1 }
 0x272   : > { %2980 = vrcp.f32 %v1219_v8  ;;  %v1221_v15 = vadd.f32 1.0, %v2969_v11  ;;  %v2605_v16 = vmul.f32 -1.442695, %v888_v9  ;;  %v892_v17 = vadd.f32 %v891_v14, %v3752_v42  ;;  %v893_v18 = vpop.f32.mrb[11].mxu1 }
 0x273   : > { %2982 = vrcp.f32 %v1220_v12  ;;  %v2606_v19 = vmul.f32 -1.442695, %v890_v13  ;;  %v894_v20 = vadd.f32 %v893_v18, %v3754_v40 }
 0x274   : > { %2984 = vrcp.f32 %v1221_v15  ;;  %v2607_v21 = vmul.f32 -1.442695, %v892_v17 }
 0x275   : > { %2986 = vpow2.f32 %v2605_v16  ;;  %v2608_v22 = vmul.f32 -1.442695, %v894_v20 }
 0x276   : > { %v2971_v24 = vpop.eup %2970  ;;  %2988 = vpow2.f32 %v2606_v19 }
 0x277   : > { %v2973_v25 = vpop.eup %2972  ;;  %v1222_v26 = vadd.f32 1.0, %v2971_v24  ;;  %2990 = vpow2.f32 %v2607_v21  ;;  %v897_v27 = vpop.f32.mrb[12].mxu1 }
 0x278   : > { %v2975_v41 = vpop.eup %2974  ;;  %v1223_v28 = vadd.f32 1.0, %v2973_v25  ;;  %2992 = vpow2.f32 %v2608_v22  ;;  %v898_v29 = vadd.f32 %v897_v27, %v3752_v42  ;;  %v899_v30 = vpop.f32.mrb[13].mxu1 }
 0x279   : > { %v2977_v31 = vpop.eup %2976  ;;  %2994 = vrcp.f32 %v1222_v26  ;;  %v1224_v32 = vadd.f32 1.0, %v2975_v41  ;;  %v900_v33 = vadd.f32 %v899_v30, %v3754_v40  ;;  %v901_v34 = vpop.f32.mrb[14].mxu1 }
 0x27a   : > { %2996 = vrcp.f32 %v1223_v28  ;;  %v1225_v35 = vadd.f32 1.0, %v2977_v31  ;;  %v2609_v36 = vmul.f32 -1.442695, %v898_v29  ;;  %v902_v37 = vadd.f32 %v901_v34, %v3752_v42  ;;  %v903_v38 = vpop.f32.mrb[15].mxu1 }
 0x27b   : > { %v2979_v39 = vpop.eup %2978  ;;  %2998 = vrcp.f32 %v1224_v32  ;;  %v2610_v43 = vmul.f32 -1.442695, %v900_v33  ;;  %v904_v44 = vadd.f32 %v903_v38, %v3754_v40 }
 0x27c   : > { %v2981_v45 = vpop.eup %2980  ;;  %3000 = vrcp.f32 %v1225_v35  ;;  %v2611_v46 = vmul.f32 -1.442695, %v902_v37  ;;  %v1413_v47 = vsel %vm1412_vm0, %v2979_v39, 0.0 }
 0x27d   : > { %v2983_v48 = vpop.eup %2982  ;;  %3002 = vpow2.f32 %v2609_v36  ;;  %v2612_v49 = vmul.f32 -1.442695, %v904_v44  ;;  %1686 = vmax.xlane.f32.xlu0 %v1413_v47  ;;  %2360 = vst [vmem:[%s3779_s10] sm:$0xff] %v1413_v47 }
 0x27e   : > { %v2985_v50 = vpop.eup %2984  ;;  %3004 = vpow2.f32 %v2610_v43  ;;  %v1414_v51 = vsel %vm1412_vm0, %v2983_v48, 0.0 }
 0x27f   : > { %v2987_v52 = vpop.eup %2986  ;;  %3006 = vpow2.f32 %v2611_v46  ;;  %v907_v53 = vpop.f32.mrb[16].mxu1  ;;  %v1445_v54 = vpack.c.bf16 %v2985_v50, %v2981_v45  ;;  %2361 = vst [vmem:[%s3779_s10 + $0x10] sm:$0xff] %v1414_v51 }
 0x280   : > { %v2989_v55 = vpop.eup %2988  ;;  %v1226_v56 = vadd.f32 1.0, %v2987_v52  ;;  %3008 = vpow2.f32 %v2612_v49  ;;  %v908_v57 = vadd.f32 %v907_v53, %v3752_v42  ;;  %v909_v58 = vpop.f32.mrb[17].mxu1 }
 0x281   : > { %v2991_v59 = vpop.eup %2990  ;;  %v1227_v60 = vadd.f32 1.0, %v2989_v55  ;;  %v910_v61 = vadd.f32 %v909_v58, %v3754_v40  ;;  %v911_v62 = vpop.f32.mrb[18].mxu1  ;;  %2790 = vmatprep.mubr.bf16.mxu0 %v1445_v54  ;;  %1688 = vmax.xlane.f32.xlu0 %v1414_v51 }
 0x282   : > { %v2993_v63 = vpop.eup %2992  ;;  %3010 = vrcp.f32 %v1226_v56  ;;  %v1228_v0 = vadd.f32 1.0, %v2991_v59  ;;  %v2613_v1 = vmul.f32 -1.442695, %v908_v57  ;;  %v912_v2 = vadd.f32 %v911_v62, %v3752_v42  ;;  %v913_v3 = vpop.f32.mrb[19].mxu1 }
 0x283   : > { %v2995_v4 = vpop.eup %2994  ;;  %3012 = vrcp.f32 %v1227_v60  ;;  %v1229_v5 = vadd.f32 1.0, %v2993_v63  ;;  %v2614_v6 = vmul.f32 -1.442695, %v910_v61  ;;  %v914_v7 = vadd.f32 %v913_v3, %v3754_v40 }
 0x284   : > { %v2997_v8 = vpop.eup %2996  ;;  %3014 = vrcp.f32 %v1228_v0  ;;  %v2615_v9 = vmul.f32 -1.442695, %v912_v2  ;;  %v1415_v10 = vsel %vm1412_vm0, %v2995_v4, 0.0 }
 0x285   : > { %v2999_v11 = vpop.eup %2998  ;;  %3016 = vrcp.f32 %v1229_v5  ;;  %v2616_v12 = vmul.f32 -1.442695, %v914_v7  ;;  %1690 = vmax.xlane.f32.xlu1 %v1415_v10  ;;  %2362 = vst [vmem:[%s3779_s10 + $0x20] sm:$0xff] %v1415_v10 }
 0x286   : > { %v3001_v13 = vpop.eup %3000  ;;  %3018 = vpow2.f32 %v2613_v1  ;;  %v1416_v14 = vsel %vm1412_vm0, %v2999_v11, 0.0 }
 0x287   : > { %v3003_v15 = vpop.eup %3002  ;;  %3020 = vpow2.f32 %v2614_v6  ;;  %v917_v16 = vpop.f32.mrb[20].mxu1  ;;  %2363 = vst [vmem:[%s3779_s10 + $0x30] sm:$0xff] %v1416_v14  ;;  %v1446_v17 = vpack.c.bf16 %v3001_v13, %v2997_v8 }
 0x288   : > { %v3005_v18 = vpop.eup %3004  ;;  %v1230_v19 = vadd.f32 1.0, %v3003_v15  ;;  %3022 = vpow2.f32 %v2615_v9  ;;  %v918_v20 = vadd.f32 %v917_v16, %v3752_v42  ;;  %v919_v21 = vpop.f32.mrb[21].mxu1 }
 0x289   : > { %v3007_v22 = vpop.eup %3006  ;;  %v1231_v24 = vadd.f32 1.0, %v3005_v18  ;;  %3024 = vpow2.f32 %v2616_v12  ;;  %v920_v25 = vadd.f32 %v919_v21, %v3754_v40  ;;  %v921_v26 = vpop.f32.mrb[22].mxu1  ;;  %1692 = vmax.xlane.f32.xlu1 %v1416_v14  ;;  %2791 = vmatmul.mubr.bf16.vlgmr.msra.gmra.mrb[32].mxu0 %v1446_v17 }
 0x28a   : > { %v3009_v27 = vpop.eup %3008  ;;  %3026 = vrcp.f32 %v1230_v19  ;;  %v1232_v41 = vadd.f32 1.0, %v3007_v22  ;;  %v2617_v28 = vmul.f32 -1.442695, %v918_v20  ;;  %v922_v29 = vadd.f32 %v921_v26, %v3752_v42  ;;  %v923_v30 = vpop.f32.mrb[23].mxu1 }
 0x28b   : > { %3028 = vrcp.f32 %v1231_v24  ;;  %v1233_v31 = vadd.f32 1.0, %v3009_v27  ;;  %v2618_v32 = vmul.f32 -1.442695, %v920_v25  ;;  %v924_v33 = vadd.f32 %v923_v30, %v3754_v40 }
 0x28c   : > { %v3011_v34 = vpop.eup %3010  ;;  %3030 = vrcp.f32 %v1232_v41  ;;  %v2619_v35 = vmul.f32 -1.442695, %v922_v29 }
 0x28d   : > { %v3013_v36 = vpop.eup %3012  ;;  %3032 = vrcp.f32 %v1233_v31  ;;  %v2620_v37 = vmul.f32 -1.442695, %v924_v33  ;;  %v3801_v38 = vsel %vm1412_vm0, %v3011_v34, 0.0 }
 0x28e   : > { %v3015_v39 = vpop.eup %3014  ;;  %3034 = vpow2.f32 %v2617_v28  ;;  %2364 = vst [vmem:[%s3779_s10 + $0x40] sm:$0xff] %v3801_v38  ;;  %1694 = vmax.xlane.f32.xlu0 %v3801_v38 }
 0x28f   : > { %v3017_v43 = vpop.eup %3016  ;;  %3036 = vpow2.f32 %v2618_v32  ;;  %v927_v44 = vpop.f32.mrb[24].mxu1  ;;  %v3808_v45 = vsel %vm1412_vm0, %v3015_v39, 0.0 }
 0x290   : > { %v3019_v46 = vpop.eup %3018  ;;  %3038 = vpow2.f32 %v2619_v35  ;;  %v928_v47 = vadd.f32 %v927_v44, %v3752_v42  ;;  %2365 = vst [vmem:[%s3779_s10 + $0x50] sm:$0xff] %v3808_v45  ;;  %1696 = vmax.xlane.f32.xlu1 %v3808_v45  ;;  %v929_v48 = vpop.f32.mrb[25].mxu1  ;;  %v1447_v49 = vpack.c.bf16 %v3017_v43, %v3013_v36 }
 0x291   : > { %v3021_v50 = vpop.eup %3020  ;;  %v1234_v51 = vadd.f32 1.0, %v3019_v46  ;;  %3040 = vpow2.f32 %v2620_v37  ;;  %v930_v52 = vadd.f32 %v929_v48, %v3754_v40  ;;  %v931_v53 = vpop.f32.mrb[26].mxu1 }
 0x292   : > { %v3023_v54 = vpop.eup %3022  ;;  %v1235_v55 = vadd.f32 1.0, %v3021_v50  ;;  %v932_v56 = vadd.f32 %v931_v53, %v3752_v42  ;;  %2794 = vmatprep.mubr.bf16.mxu0 %v1447_v49  ;;  %v933_v57 = vpop.f32.mrb[27].mxu1  ;;  %v2621_v60 = vmul.f32 -1.442695, %v928_v47 }
 0x293   : > { %v3025_v58 = vpop.eup %3024  ;;  %3042 = vrcp.f32 %v1234_v51  ;;  %v1236_v59 = vadd.f32 1.0, %v3023_v54  ;;  %v934_v61 = vadd.f32 %v933_v57, %v3754_v40  ;;  %v2622_v0 = vmul.f32 -1.442695, %v930_v52 }
 0x294   : > { %v3027_v62 = vpop.eup %3026  ;;  %3044 = vrcp.f32 %v1235_v55  ;;  %v1237_v63 = vadd.f32 1.0, %v3025_v58  ;;  %v2623_v2 = vmul.f32 -1.442695, %v932_v56 }
 0x295   : > { %v3029_v1 = vpop.eup %3028  ;;  %3046 = vrcp.f32 %v1236_v59  ;;  %v3819_v3 = vsel %vm1412_vm0, %v3027_v62, 0.0  ;;  %v2624_v5 = vmul.f32 -1.442695, %v934_v61 }
 0x296   : > { %v3031_v4 = vpop.eup %3030  ;;  %3048 = vrcp.f32 %v1237_v63  ;;  %2366 = vst [vmem:[%s3779_s10 + $0x60] sm:$0xff] %v3819_v3  ;;  %1698 = vmax.xlane.f32.xlu0 %v3819_v3 }
 0x297   : > { %v3033_v6 = vpop.eup %3032  ;;  %3050 = vpow2.f32 %v2621_v60  ;;  %v937_v7 = vpop.f32.mrb[28].mxu1  ;;  %v3826_v8 = vsel %vm1412_vm0, %v3031_v4, 0.0 }
 0x298   : > { %v3035_v9 = vpop.eup %3034  ;;  %3052 = vpow2.f32 %v2622_v0  ;;  %v938_v10 = vadd.f32 %v937_v7, %v3752_v42  ;;  %2367 = vst [vmem:[%s3779_s10 + $0x70] sm:$0xff] %v3826_v8  ;;  %1700 = vmax.xlane.f32.xlu1 %v3826_v8  ;;  %v939_v11 = vpop.f32.mrb[29].mxu1  ;;  %v1448_v12 = vpack.c.bf16 %v3033_v6, %v3029_v1 }
 0x299   : > { %v3037_v13 = vpop.eup %3036  ;;  %v1238_v14 = vadd.f32 1.0, %v3035_v9  ;;  %3054 = vpow2.f32 %v2623_v2  ;;  %v940_v15 = vadd.f32 %v939_v11, %v3754_v40  ;;  %v941_v16 = vpop.f32.mrb[30].mxu1 }
 0x29a   : > { %v3039_v17 = vpop.eup %3038  ;;  %v1239_v18 = vadd.f32 1.0, %v3037_v13  ;;  %3056 = vpow2.f32 %v2624_v5  ;;  %v942_v19 = vadd.f32 %v941_v16, %v3752_v42  ;;  %2795 = vmatmul.mubr.bf16.gmra.mrb[36].mxu0 %v1448_v12  ;;  %v943_v20 = vpop.f32.mrb[31].mxu1  ;;  %v2625_v24 = vmul.f32 -1.442695, %v938_v10 }
 0x29b   : > { %v3041_v21 = vpop.eup %3040  ;;  %3058 = vrcp.f32 %v1238_v14  ;;  %v1240_v22 = vadd.f32 1.0, %v3039_v17  ;;  %v944_v25 = vadd.f32 %v943_v20, %v3754_v40  ;;  %v2626_v27 = vmul.f32 -1.442695, %v940_v15 }
 0x29c   : > { %3060 = vrcp.f32 %v1239_v18  ;;  %v1241_v26 = vadd.f32 1.0, %v3041_v21  ;;  %v2627_v28 = vmul.f32 -1.442695, %v942_v19 }
 0x29d   : > { %v3043_v41 = vpop.eup %3042  ;;  %3062 = vrcp.f32 %v1240_v22  ;;  %v2628_v30 = vmul.f32 -1.442695, %v944_v25 }
 0x29e   : > { %v3045_v29 = vpop.eup %3044  ;;  %3064 = vrcp.f32 %v1241_v26  ;;  %v3837_v31 = vsel %vm1412_vm0, %v3043_v41, 0.0 }
 0x29f   : > { %v3047_v32 = vpop.eup %3046  ;;  %3066 = vpow2.f32 %v2625_v24  ;;  %2368 = vst [vmem:[%s3779_s10 + $0x80] sm:$0xff] %v3837_v31  ;;  %1702 = vmax.xlane.f32.xlu0 %v3837_v31  ;;  %v947_v33 = vpop.f32.mrb[32].mxu1 }
 0x2a0   : > { %v3049_v34 = vpop.eup %3048  ;;  %3068 = vpow2.f32 %v2626_v27  ;;  %v948_v35 = vadd.f32 %v947_v33, %v3752_v42  ;;  %v3845_v36 = vsel %vm1412_vm0, %v3047_v32, 0.0  ;;  %v949_v37 = vpop.f32.mrb[33].mxu1 }
 0x2a1   : > { %v3051_v39 = vpop.eup %3050  ;;  %3070 = vpow2.f32 %v2627_v28  ;;  %2369 = vst [vmem:[%s3779_s10 + $0x90] sm:$0xff] %v3845_v36  ;;  %1704 = vmax.xlane.f32.xlu1 %v3845_v36  ;;  %v950_v43 = vadd.f32 %v949_v37, %v3754_v40  ;;  %v951_v44 = vpop.f32.mrb[34].mxu1  ;;  %v1449_v46 = vpack.c.bf16 %v3049_v34, %v3045_v29 }
 0x2a2   : > { %v3053_v47 = vpop.eup %3052  ;;  %v1242_v48 = vadd.f32 1.0, %v3051_v39  ;;  %3072 = vpow2.f32 %v2628_v30  ;;  %v952_v49 = vadd.f32 %v951_v44, %v3752_v42  ;;  %v953_v50 = vpop.f32.mrb[35].mxu1  ;;  %v2629_v56 = vmul.f32 -1.442695, %v948_v35 }
 0x2a3   : > { %v3055_v51 = vpop.eup %3054  ;;  %v1243_v52 = vadd.f32 1.0, %v3053_v47  ;;  %2798 = vmatprep.mubr.bf16.mxu0 %v1449_v46  ;;  %v954_v53 = vadd.f32 %v953_v50, %v3754_v40  ;;  %v2630_v59 = vmul.f32 -1.442695, %v950_v43 }
 0x2a4   : > { %v3057_v54 = vpop.eup %3056  ;;  %3074 = vrcp.f32 %v1242_v48  ;;  %v1244_v55 = vadd.f32 1.0, %v3055_v51  ;;  %v2631_v61 = vmul.f32 -1.442695, %v952_v49 }
 0x2a5   : > { %v3059_v57 = vpop.eup %3058  ;;  %3076 = vrcp.f32 %v1243_v52  ;;  %v1245_v58 = vadd.f32 1.0, %v3057_v54  ;;  %v2632_v0 = vmul.f32 -1.442695, %v954_v53 }
 0x2a6   : > { %v3061_v60 = vpop.eup %3060  ;;  %3078 = vrcp.f32 %v1244_v55  ;;  %v3855_v62 = vsel %vm1412_vm0, %v3059_v57, 0.0 }
 0x2a7   : > { %v3063_v63 = vpop.eup %3062  ;;  %3080 = vrcp.f32 %v1245_v58  ;;  %2370 = vst [vmem:[%s3779_s10 + $0xa0] sm:$0xff] %v3855_v62  ;;  %1706 = vmax.xlane.f32.xlu0 %v3855_v62  ;;  %v957_v1 = vpop.f32.mrb[36].mxu1 }
 0x2a8   : > { %v3065_v2 = vpop.eup %3064  ;;  %3082 = vpow2.f32 %v2629_v56  ;;  %v958_v4 = vadd.f32 %v957_v1, %v3752_v42  ;;  %v3863_v5 = vsel %vm1412_vm0, %v3063_v63, 0.0  ;;  %v959_v6 = vpop.f32.mrb[37].mxu1 }
 0x2a9   : > { %v3067_v7 = vpop.eup %3066  ;;  %3084 = vpow2.f32 %v2630_v59  ;;  %2371 = vst [vmem:[%s3779_s10 + $0xb0] sm:$0xff] %v3863_v5  ;;  %1708 = vmax.xlane.f32.xlu1 %v3863_v5  ;;  %v960_v9 = vadd.f32 %v959_v6, %v3754_v40  ;;  %v961_v10 = vpop.f32.mrb[38].mxu1  ;;  %v1450_v11 = vpack.c.bf16 %v3065_v2, %v3061_v60 }
 0x2aa   : > { %v3069_v12 = vpop.eup %3068  ;;  %v1246_v13 = vadd.f32 1.0, %v3067_v7  ;;  %3086 = vpow2.f32 %v2631_v61  ;;  %v962_v14 = vadd.f32 %v961_v10, %v3752_v42  ;;  %v963_v15 = vpop.f32.mrb[39].mxu1  ;;  %v2633_v21 = vmul.f32 -1.442695, %v958_v4 }
 0x2ab   : > { %v3071_v16 = vpop.eup %3070  ;;  %v1247_v17 = vadd.f32 1.0, %v3069_v12  ;;  %3088 = vpow2.f32 %v2632_v0  ;;  %2799 = vmatmul.mubr.bf16.gmra.mrb[40].mxu0 %v1450_v11  ;;  %v964_v18 = vadd.f32 %v963_v15, %v3754_v40  ;;  %v2634_v24 = vmul.f32 -1.442695, %v960_v9 }
 0x2ac   : > { %v3073_v19 = vpop.eup %3072  ;;  %3090 = vrcp.f32 %v1246_v13  ;;  %v1248_v20 = vadd.f32 1.0, %v3071_v16  ;;  %v2635_v26 = vmul.f32 -1.442695, %v962_v14 }
 0x2ad   : > { %3092 = vrcp.f32 %v1247_v17  ;;  %v1249_v22 = vadd.f32 1.0, %v3073_v19  ;;  %v2636_v41 = vmul.f32 -1.442695, %v964_v18 }
 0x2ae   : > { %v3075_v25 = vpop.eup %3074  ;;  %3094 = vrcp.f32 %v1248_v20 }
 0x2af   : > { %v3077_v27 = vpop.eup %3076  ;;  %3096 = vrcp.f32 %v1249_v22  ;;  %v3873_v28 = vsel %vm1412_vm0, %v3075_v25, 0.0  ;;  %v967_v29 = vpop.f32.mrb[40].mxu1 }
 0x2b0   : > { %v3079_v30 = vpop.eup %3078  ;;  %3098 = vpow2.f32 %v2633_v21  ;;  %2372 = vst [vmem:[%s3779_s10 + $0xc0] sm:$0xff] %v3873_v28  ;;  %1710 = vmax.xlane.f32.xlu0 %v3873_v28  ;;  %v968_v32 = vadd.f32 %v967_v29, %v3752_v42  ;;  %v969_v33 = vpop.f32.mrb[41].mxu1 }
 0x2b1   : > { %v3081_v34 = vpop.eup %3080  ;;  %3100 = vpow2.f32 %v2634_v24  ;;  %v3881_v35 = vsel %vm1412_vm0, %v3079_v30, 0.0  ;;  %v970_v37 = vadd.f32 %v969_v33, %v3754_v40  ;;  %v971_v39 = vpop.f32.mrb[42].mxu1 }
 0x2b2   : > { %v3083_v43 = vpop.eup %3082  ;;  %3102 = vpow2.f32 %v2635_v26  ;;  %v2637_v44 = vmul.f32 -1.442695, %v968_v32  ;;  %2373 = vst [vmem:[%s3779_s10 + $0xd0] sm:$0xff] %v3881_v35  ;;  %1712 = vmax.xlane.f32.xlu1 %v3881_v35  ;;  %v972_v46 = vadd.f32 %v971_v39, %v3752_v42  ;;  %v1451_v47 = vpack.c.bf16 %v3081_v34, %v3077_v27  ;;  %v973_v48 = vpop.f32.mrb[43].mxu1 }
 0x2b3   : > { %v3085_v49 = vpop.eup %3084  ;;  %v1250_v50 = vadd.f32 1.0, %v3083_v43  ;;  %3104 = vpow2.f32 %v2636_v41  ;;  %v974_v51 = vadd.f32 %v973_v48, %v3754_v40  ;;  %v2638_v56 = vmul.f32 -1.442695, %v970_v37 }
 0x2b4   : > { %v3087_v52 = vpop.eup %3086  ;;  %v1251_v53 = vadd.f32 1.0, %v3085_v49  ;;  %3106 = vpow2.f32 %v2637_v44  ;;  %2802 = vmatprep.mubr.bf16.mxu0 %v1451_v47  ;;  %v2639_v59 = vmul.f32 -1.442695, %v972_v46 }
 0x2b5   : > { %v3089_v54 = vpop.eup %3088  ;;  %3108 = vrcp.f32 %v1250_v50  ;;  %v1252_v55 = vadd.f32 1.0, %v3087_v52  ;;  %v2640_v61 = vmul.f32 -1.442695, %v974_v51 }
 0x2b6   : > { %v3091_v57 = vpop.eup %3090  ;;  %3110 = vrcp.f32 %v1251_v53  ;;  %v1253_v58 = vadd.f32 1.0, %v3089_v54 }
 0x2b7   : > { %v3093_v60 = vpop.eup %3092  ;;  %3112 = vrcp.f32 %v1252_v55  ;;  %v3891_v63 = vsel %vm1412_vm0, %v3091_v57, 0.0  ;;  %v977_v0 = vpop.f32.mrb[44].mxu1 }
 0x2b8   : > { %v3095_v1 = vpop.eup %3094  ;;  %3114 = vrcp.f32 %v1253_v58  ;;  %2374 = vst [vmem:[%s3779_s10 + $0xe0] sm:$0xff] %v3891_v63  ;;  %1714 = vmax.xlane.f32.xlu0 %v3891_v63  ;;  %v978_v2 = vadd.f32 %v977_v0, %v3752_v42  ;;  %v979_v4 = vpop.f32.mrb[45].mxu1 }
 0x2b9   : > { %v3097_v6 = vpop.eup %3096  ;;  %3116 = vpow2.f32 %v2638_v56  ;;  %v3899_v7 = vsel %vm1412_vm0, %v3095_v1, 0.0  ;;  %v981_v9 = vpop.f32.mrb[46].mxu1  ;;  %v980_v12 = vadd.f32 %v979_v4, %v3754_v40 }
 0x2ba   : > { %v3099_v10 = vpop.eup %3098  ;;  %3118 = vpow2.f32 %v2639_v59  ;;  %v2641_v11 = vmul.f32 -1.442695, %v978_v2  ;;  %2375 = vst [vmem:[%s3779_s10 + $0xf0] sm:$0xff] %v3899_v7  ;;  %1716 = vmax.xlane.f32.xlu1 %v3899_v7  ;;  %v1452_v13 = vpack.c.bf16 %v3097_v6, %v3093_v60  ;;  %v983_v14 = vpop.f32.mrb[47].mxu1  ;;  %v982_v17 = vadd.f32 %v981_v9, %v3752_v42 }
 0x2bb   : > { %v3101_v15 = vpop.eup %3100  ;;  %v1254_v16 = vadd.f32 1.0, %v3099_v10  ;;  %3120 = vpow2.f32 %v2640_v61  ;;  %v984_v20 = vadd.f32 %v983_v14, %v3754_v40  ;;  %v2642_v26 = vmul.f32 -1.442695, %v980_v12 }
 0x2bc   : > { %v3103_v18 = vpop.eup %3102  ;;  %v1255_v19 = vadd.f32 1.0, %v3101_v15  ;;  %3122 = vpow2.f32 %v2641_v11  ;;  %2803 = vmatmul.mubr.bf16.gmra.mrb[44].mxu0 %v1452_v13  ;;  %v2643_v29 = vmul.f32 -1.442695, %v982_v17 }
 0x2bd   : > { %v3105_v21 = vpop.eup %3104  ;;  %3124 = vrcp.f32 %v1254_v16  ;;  %v1256_v22 = vadd.f32 1.0, %v3103_v18  ;;  %v2644_v33 = vmul.f32 -1.442695, %v984_v20 }
 0x2be   : > { %v3107_v24 = vpop.eup %3106  ;;  %3126 = vrcp.f32 %v1255_v19  ;;  %v1257_v25 = vadd.f32 1.0, %v3105_v21 }
 0x2bf   : > { %v3109_v27 = vpop.eup %3108  ;;  %3128 = vrcp.f32 %v1256_v22  ;;  %v1258_v41 = vadd.f32 1.0, %v3107_v24  ;;  %v987_v30 = vpop.f32.mrb[48].mxu1 }
 0x2c0   : > { %v3111_v32 = vpop.eup %3110  ;;  %3130 = vrcp.f32 %v1257_v25  ;;  %v3909_v34 = vsel %vm1412_vm0, %v3109_v27, 0.0  ;;  %v988_v37 = vadd.f32 %v987_v30, %v3752_v42  ;;  %v989_v39 = vpop.f32.mrb[49].mxu1 }
 0x2c1   : > { %v3113_v43 = vpop.eup %3112  ;;  %3132 = vrcp.f32 %v1258_v41  ;;  %2376 = vst [vmem:[%s3779_s10 + $0x100] sm:$0xff] %v3909_v34  ;;  %1718 = vmax.xlane.f32.xlu0 %v3909_v34  ;;  %v991_v44 = vpop.f32.mrb[50].mxu1  ;;  %v990_v49 = vadd.f32 %v989_v39, %v3754_v40 }
 0x2c2   : > { %v3115_v46 = vpop.eup %3114  ;;  %3134 = vpow2.f32 %v2642_v26  ;;  %v2645_v47 = vmul.f32 -1.442695, %v988_v37  ;;  %v3917_v48 = vsel %vm1412_vm0, %v3113_v43, 0.0  ;;  %v993_v50 = vpop.f32.mrb[51].mxu1  ;;  %v992_v52 = vadd.f32 %v991_v44, %v3752_v42 }
 0x2c3   : > { %v3117_v51 = vpop.eup %3116  ;;  %3136 = vpow2.f32 %v2643_v29  ;;  %2377 = vst [vmem:[%s3779_s10 + $0x110] sm:$0xff] %v3917_v48  ;;  %1720 = vmax.xlane.f32.xlu1 %v3917_v48  ;;  %v1453_v53 = vpack.c.bf16 %v3115_v46, %v3111_v32  ;;  %v994_v56 = vadd.f32 %v993_v50, %v3754_v40  ;;  %v2646_v61 = vmul.f32 -1.442695, %v990_v49 }
 0x2c4   : > { %v3119_v54 = vpop.eup %3118  ;;  %v1259_v55 = vadd.f32 1.0, %v3117_v51  ;;  %3138 = vpow2.f32 %v2644_v33  ;;  %v2647_v2 = vmul.f32 -1.442695, %v992_v52 }
 0x2c5   : > { %v3121_v57 = vpop.eup %3120  ;;  %v1260_v58 = vadd.f32 1.0, %v3119_v54  ;;  %3140 = vpow2.f32 %v2645_v47  ;;  %2806 = vmatprep.mubr.bf16.mxu0 %v1453_v53  ;;  %v2648_v9 = vmul.f32 -1.442695, %v994_v56 }
 0x2c6   : > { %v3123_v59 = vpop.eup %3122  ;;  %3142 = vrcp.f32 %v1259_v55  ;;  %v1261_v60 = vadd.f32 1.0, %v3121_v57 }
 0x2c7   : > { %v3125_v0 = vpop.eup %3124  ;;  %3144 = vrcp.f32 %v1260_v58  ;;  %v1262_v1 = vadd.f32 1.0, %v3123_v59  ;;  %v997_v4 = vpop.f32.mrb[52].mxu1 }
 0x2c8   : > { %v3127_v6 = vpop.eup %3126  ;;  %3146 = vrcp.f32 %v1261_v60  ;;  %v3927_v10 = vsel %vm1412_vm0, %v3125_v0, 0.0  ;;  %v998_v11 = vadd.f32 %v997_v4, %v3752_v42  ;;  %v999_v12 = vpop.f32.mrb[53].mxu1 }
 0x2c9   : > { %v3129_v13 = vpop.eup %3128  ;;  %3148 = vrcp.f32 %v1262_v1  ;;  %2378 = vst [vmem:[%s3779_s10 + $0x120] sm:$0xff] %v3927_v10  ;;  %1722 = vmax.xlane.f32.xlu0 %v3927_v10  ;;  %v1000_v14 = vadd.f32 %v999_v12, %v3754_v40  ;;  %v1001_v15 = vpop.f32.mrb[54].mxu1 }
 0x2ca   : > { %v3131_v16 = vpop.eup %3130  ;;  %3150 = vpow2.f32 %v2646_v61  ;;  %v2649_v17 = vmul.f32 -1.442695, %v998_v11  ;;  %v3936_v18 = vsel %vm1412_vm0, %v3129_v13, 0.0  ;;  %v1003_v19 = vpop.f32.mrb[55].mxu1  ;;  %v1002_v22 = vadd.f32 %v1001_v15, %v3752_v42 }
 0x2cb   : > { %v3133_v20 = vpop.eup %3132  ;;  %3152 = vpow2.f32 %v2647_v2  ;;  %2379 = vst [vmem:[%s3779_s10 + $0x130] sm:$0xff] %v3936_v18  ;;  %1724 = vmax.xlane.f32.xlu1 %v3936_v18  ;;  %v2650_v21 = vmul.f32 -1.442695, %v1000_v14  ;;  %v1454_v24 = vpack.c.bf16 %v3131_v16, %v3127_v6  ;;  %v1004_v26 = vadd.f32 %v1003_v19, %v3754_v40 }
 0x2cc   : > { %v3135_v25 = vpop.eup %3134  ;;  %3154 = vpow2.f32 %v2648_v9  ;;  %v3945_v27 = vsel %vm1412_vm0, %v3133_v20, 0.0  ;;  %v2651_v39 = vmul.f32 -1.442695, %v1002_v22 }
 0x2cd   : > { %v3137_v41 = vpop.eup %3136  ;;  %v1263_v29 = vadd.f32 1.0, %v3135_v25  ;;  %3156 = vpow2.f32 %v2649_v17  ;;  %2807 = vmatmul.mubr.bf16.gmra.mrb[48].mxu0 %v1454_v24  ;;  %2380 = vst [vmem:[%s3779_s10 + $0x140] sm:$0xff] %v3945_v27  ;;  %1726 = vmax.xlane.f32.xlu0 %v3945_v27  ;;  %v2652_v47 = vmul.f32 -1.442695, %v1004_v26 }
 0x2ce   : > { %v3139_v30 = vpop.eup %3138  ;;  %v1264_v32 = vadd.f32 1.0, %v3137_v41  ;;  %3158 = vpow2.f32 %v2650_v21 }
 0x2cf   : > { %v3141_v33 = vpop.eup %3140  ;;  %3160 = vrcp.f32 %v1263_v29  ;;  %v1265_v37 = vadd.f32 1.0, %v3139_v30  ;;  %v1007_v43 = vpop.f32.mrb[56].mxu1 }
 0x2d0   : > { %v3143_v44 = vpop.eup %3142  ;;  %3162 = vrcp.f32 %v1264_v32  ;;  %v1266_v46 = vadd.f32 1.0, %v3141_v33  ;;  %v1008_v49 = vadd.f32 %v1007_v43, %v3752_v42  ;;  %v1009_v50 = vpop.f32.mrb[57].mxu1 }
 0x2d1   : > { %v3145_v51 = vpop.eup %3144  ;;  %3164 = vrcp.f32 %v1265_v37  ;;  %v1010_v52 = vadd.f32 %v1009_v50, %v3754_v40  ;;  %v1011_v53 = vpop.f32.mrb[58].mxu1 }
 0x2d2   : > { %v3147_v54 = vpop.eup %3146  ;;  %3166 = vrcp.f32 %v1266_v46  ;;  %v2653_v55 = vmul.f32 -1.442695, %v1008_v49  ;;  %v3954_v56 = vsel %vm1412_vm0, %v3145_v51, 0.0  ;;  %v1013_v57 = vpop.f32.mrb[59].mxu1  ;;  %v1012_v0 = vadd.f32 %v1011_v53, %v3752_v42 }
 0x2d3   : > { %v3149_v58 = vpop.eup %3148  ;;  %3168 = vpow2.f32 %v2651_v39  ;;  %2381 = vst [vmem:[%s3779_s10 + $0x150] sm:$0xff] %v3954_v56  ;;  %1728 = vmax.xlane.f32.xlu1 %v3954_v56  ;;  %v2654_v59 = vmul.f32 -1.442695, %v1010_v52  ;;  %v1455_v60 = vpack.c.bf16 %v3147_v54, %v3143_v44  ;;  %v1014_v6 = vadd.f32 %v1013_v57, %v3754_v40 }
 0x2d4   : > { %v3151_v61 = vpop.eup %3150  ;;  %3170 = vpow2.f32 %v2652_v47  ;;  %v3962_v1 = vsel %vm1412_vm0, %v3149_v58, 0.0  ;;  %v2655_v17 = vmul.f32 -1.442695, %v1012_v0 }
 0x2d5   : > { %v3153_v2 = vpop.eup %3152  ;;  %v1267_v4 = vadd.f32 1.0, %v3151_v61  ;;  %3172 = vpow2.f32 %v2653_v55  ;;  %2810 = vmatprep.mubr.bf16.mxu0 %v1455_v60  ;;  %2382 = vst [vmem:[%s3779_s10 + $0x160] sm:$0xff] %v3962_v1  ;;  %1730 = vmax.xlane.f32.xlu0 %v3962_v1  ;;  %v2656_v24 = vmul.f32 -1.442695, %v1014_v6 }
 0x2d6   : > { %v3155_v9 = vpop.eup %3154  ;;  %v1268_v11 = vadd.f32 1.0, %v3153_v2  ;;  %3174 = vpow2.f32 %v2654_v59 }
 0x2d7   : > { %v3157_v12 = vpop.eup %3156  ;;  %3176 = vrcp.f32 %v1267_v4  ;;  %v1269_v13 = vadd.f32 1.0, %v3155_v9  ;;  %v1017_v14 = vpop.f32.mrb[60].mxu1 }
 0x2d8   : > { %v3159_v15 = vpop.eup %3158  ;;  %3178 = vrcp.f32 %v1268_v11  ;;  %v1270_v16 = vadd.f32 1.0, %v3157_v12  ;;  %v1018_v19 = vadd.f32 %v1017_v14, %v3752_v42  ;;  %v1019_v20 = vpop.f32.mrb[61].mxu1 }
 0x2d9   : > { %v3161_v21 = vpop.eup %3160  ;;  %3180 = vrcp.f32 %v1269_v13  ;;  %v1271_v22 = vadd.f32 1.0, %v3159_v15  ;;  %v1020_v25 = vadd.f32 %v1019_v20, %v3754_v40  ;;  %v1021_v26 = vpop.f32.mrb[62].mxu1 }
 0x2da   : > { %v3163_v41 = vpop.eup %3162  ;;  %3182 = vrcp.f32 %v1270_v16  ;;  %v2657_v29 = vmul.f32 -1.442695, %v1018_v19  ;;  %v1023_v30 = vpop.f32.mrb[63].mxu1  ;;  %v1022_v43 = vadd.f32 %v1021_v26, %v3752_v42 }
 0x2db   : > { %v3165_v32 = vpop.eup %3164  ;;  %3184 = vrcp.f32 %v1271_v22  ;;  %v3972_v33 = vsel %vm1412_vm0, %v3163_v41, 0.0  ;;  %v2658_v37 = vmul.f32 -1.442695, %v1020_v25  ;;  %v1024_v47 = vadd.f32 %v1023_v30, %v3754_v40 }
 0x2dc   : > { %v3167_v39 = vpop.eup %3166  ;;  %3186 = vpow2.f32 %v2655_v17  ;;  %2383 = vst [vmem:[%s3779_s10 + $0x170] sm:$0xff] %v3972_v33  ;;  %1732 = vmax.xlane.f32.xlu1 %v3972_v33  ;;  %v1456_v44 = vpack.c.bf16 %v3165_v32, %v3161_v21  ;;  %v2659_v40 = vmul.f32 -1.442695, %v1022_v43 }
 0x2dd   : > { %v3169_v46 = vpop.eup %3168  ;;  %3188 = vpow2.f32 %v2656_v24  ;;  %v3981_v49 = vsel %vm1412_vm0, %v3167_v39, 0.0  ;;  %v2660_v57 = vmul.f32 -1.442695, %v1024_v47 }
 0x2de   : > { %v3171_v50 = vpop.eup %3170  ;;  %v1272_v51 = vadd.f32 1.0, %v3169_v46  ;;  %3190 = vpow2.f32 %v2657_v29  ;;  %2811 = vmatmul.mubr.bf16.gmra.mrb[52].mxu0 %v1456_v44  ;;  %2384 = vst [vmem:[%s3779_s10 + $0x180] sm:$0xff] %v3981_v49  ;;  %1734 = vmax.xlane.f32.xlu0 %v3981_v49 }
 0x2df   : > { %v3173_v52 = vpop.eup %3172  ;;  %v1273_v53 = vadd.f32 1.0, %v3171_v50  ;;  %3192 = vpow2.f32 %v2658_v37 }
 0x2e0   : > { %v3175_v42 = vpop.eup %3174  ;;  %3194 = vrcp.f32 %v1272_v51  ;;  %v1274_v54 = vadd.f32 1.0, %v3173_v52 }
 0x2e1   : > { %v3177_v55 = vpop.eup %3176  ;;  %3196 = vrcp.f32 %v1273_v53  ;;  %v1275_v0 = vadd.f32 1.0, %v3175_v42 }
 0x2e2   : > { %v3179_v58 = vpop.eup %3178  ;;  %3198 = vrcp.f32 %v1274_v54 }
 0x2e3   : > { %v3181_v59 = vpop.eup %3180  ;;  %v3988_v60 = vsel %vm1412_vm0, %v3179_v58, 0.0  ;;  %3200 = vpow2.f32 %v2659_v40  ;;  %v3218_v40 = vld [vmem:[%s3779_s10] sm:$0xff] }
 0x2e4   : > { %v3183_v61 = vpop.eup %3182  ;;  %2385 = vst [vmem:[%s3779_s10 + $0x190] sm:$0xff] %v3988_v60  ;;  %1736 = vmax.xlane.f32.xlu1 %v3988_v60  ;;  %v1457_v2 = vpack.c.bf16 %v3181_v59, %v3177_v55  ;;  %3202 = vpow2.f32 %v2660_v57  ;;  %v3219_v59 = vld [vmem:[%s3779_s10 + $0x10] sm:$0xff] }
 0x2e5   : > { %v3185_v4 = vpop.eup %3184  ;;  %v3995_v6 = vsel %vm1412_vm0, %v3183_v61, 0.0  ;;  %3204 = vrcp.f32 %v1275_v0 }
 0x2e6   : > { %v3187_v9 = vpop.eup %3186  ;;  %2814 = vmatprep.mubr.bf16.mxu0 %v1457_v2  ;;  %2386 = vst [vmem:[%s3779_s10 + $0x1a0] sm:$0xff] %v3995_v6  ;;  %1738 = vmax.xlane.f32.xlu0 %v3995_v6 }
 0x2e7   : > { %v3189_v11 = vpop.eup %3188  ;;  %v1276_v12 = vadd.f32 1.0, %v3187_v9  ;;  %v3220_v9 = vld [vmem:[%s3779_s10 + $0x20] sm:$0xff] }
 0x2e8   : > { %v3191_v13 = vpop.eup %3190  ;;  %v1277_v14 = vadd.f32 1.0, %v3189_v11 }
 0x2e9   : > { %v3193_v15 = vpop.eup %3192  ;;  %3206 = vrcp.f32 %v1276_v12  ;;  %v1278_v16 = vadd.f32 1.0, %v3191_v13 }
 0x2ea   : > { %v3195_v17 = vpop.eup %3194  ;;  %3208 = vrcp.f32 %v1277_v14  ;;  %v1279_v22 = vadd.f32 1.0, %v3193_v15  ;;  %v3221_v15 = vld [vmem:[%s3779_s10 + $0x30] sm:$0xff] }
 0x2eb   : > { %v3197_v19 = vpop.eup %3196  ;;  %3210 = vrcp.f32 %v1278_v16  ;;  %v4002_v20 = vsel %vm1412_vm0, %v3195_v17, 0.0 }
 0x2ec   : > { %v3199_v21 = vpop.eup %3198  ;;  %2387 = vst [vmem:[%s3779_s10 + $0x1b0] sm:$0xff] %v4002_v20  ;;  %1740 = vmax.xlane.f32.xlu1 %v4002_v20  ;;  %v1458_v24 = vpack.c.bf16 %v3197_v19, %v3185_v4  ;;  %3212 = vrcp.f32 %v1279_v22 }
 0x2ed   : > { %v4009_v25 = vsel %vm1412_vm0, %v3199_v21, 0.0  ;;  %v3201_v26 = vpop.eup %3200 }
 0x2ee   : > { %2815 = vmatmul.mubr.bf16.gmra.mrb[56].mxu0 %v1458_v24  ;;  %2388 = vst [vmem:[%s3779_s10 + $0x1c0] sm:$0xff] %v4009_v25  ;;  %1742 = vmax.xlane.f32.xlu0 %v4009_v25  ;;  %v3203_v41 = vpop.eup %3202  ;;  %v1280_v29 = vadd.f32 1.0, %v3201_v26 }
 0x2ef   : > { %v1281_v30 = vadd.f32 1.0, %v3203_v41  ;;  %v3205_v32 = vpop.eup %3204 }
 0x2f0   : > { %3214 = vrcp.f32 %v1280_v29 }
 0x2f1   : > { %3216 = vrcp.f32 %v1281_v30 }
 0x2f3   : > { %v3207_v37 = vpop.eup %3206 }
 0x2f4   : > { %v3209_v39 = vpop.eup %3208  ;;  %v4016_v43 = vsel %vm1412_vm0, %v3207_v37, 0.0 }
 0x2f5   : > { %v3211_v44 = vpop.eup %3210  ;;  %2389 = vst [vmem:[%s3779_s10 + $0x1d0] sm:$0xff] %v4016_v43  ;;  %1744 = vmax.xlane.f32.xlu1 %v4016_v43  ;;  %v1459_v46 = vpack.c.bf16 %v3209_v39, %v3205_v32 }
 0x2f6   : > { %v4023_v47 = vsel %vm1412_vm0, %v3211_v44, 0.0  ;;  %v3213_v50 = vpop.eup %3212 }
 0x2f7   : > { %2818 = vmatprep.mubr.bf16.mxu0 %v1459_v46  ;;  %2390 = vst [vmem:[%s3779_s10 + $0x1e0] sm:$0xff] %v4023_v47  ;;  %1746 = vmax.xlane.f32.xlu0 %v4023_v47 }
 0x2fa   : > { %v3215_v51 = vpop.eup %3214 }
 0x2fb   : > { %v3217_v52 = vpop.eup %3216  ;;  %v4030_v53 = vsel %vm1412_vm0, %v3215_v51, 0.0 }
 0x2fc   : > { %2391 = vst [vmem:[%s3779_s10 + $0x1f0] sm:$0xff] %v4030_v53  ;;  %1748 = vmax.xlane.f32.xlu1 %v4030_v53  ;;  %v1460_v42 = vpack.c.bf16 %v3217_v52, %v3213_v50 }
 0x2fe   : > { %2819 = vmatmul.mubr.bf16.gmra.mrb[60].mxu0 %v1460_v42 }
 0x30a   : > { %v4035_v54 = vpop.xlane.xlu0 %1686 }
 0x30b   : > { %4998 = vst [vmem:[#allocation16_spill] sm:$0xff] %v4035_v54  ;;  %vm1750_vm1 = vcmp.ge.f32.partialorder %v3218_v40, %v4035_v54 }
 0x30c   : > { %v4040_v55 = vsel %vm1750_vm1, %v3769_v23, 128 }
 0x30d   : > { %v1815_v57 = vshra.s32 %v4040_v55, 16 }
 0x30e   : > { %v4043_v58 = vpop.xlane.xlu0 %1688 }
 0x30f   : > { %4999 = vst [vmem:[#allocation17_spill] sm:$0xff] %v4043_v58  ;;  %vm1751_vm2 = vcmp.ge.f32.partialorder %v3219_v59, %v4043_v58  ;;  %v4047_v61 = vcvt.s32.f32 %v1815_v57 }
 0x310   : > { %v4050_v0 = vsel %vm1751_vm2, %v3769_v23, 128 }
 0x311   : > { %1818 = vmin.xlane.f32.xlu0 %v4047_v61  ;;  %v1829_v2 = vshra.s32 %v4050_v0, 16 }
 0x312   : > { %v4054_v4 = vpop.xlane.xlu1 %1690 }
 0x313   : > { %5000 = vst [vmem:[#allocation18_spill] sm:$0xff] %v4054_v4  ;;  %vm1752_vm3 = vcmp.ge.f32.partialorder %v3220_v9, %v4054_v4  ;;  %v4058_v11 = vcvt.s32.f32 %v1829_v2 }
 0x314   : > { %v4061_v12 = vsel %vm1752_vm3, %v3769_v23, 128 }
 0x315   : > { %1832 = vmin.xlane.f32.xlu1 %v4058_v11  ;;  %v1843_v13 = vshra.s32 %v4061_v12, 16 }
 0x316   : > { %v4065_v14 = vpop.xlane.xlu1 %1692 }
 0x317   : > { %5001 = vst [vmem:[#allocation19_spill] sm:$0xff] %v4065_v14  ;;  %vm1753_vm4 = vcmp.ge.f32.partialorder %v3221_v15, %v4065_v14  ;;  %v4069_v16 = vcvt.s32.f32 %v1843_v13 }
 0x318   : > { %v4072_v17 = vsel %vm1753_vm4, %v3769_v23, 128 }
 0x319   : > { %1846 = vmin.xlane.f32.xlu0 %v4069_v16  ;;  %v1857_v19 = vshra.s32 %v4072_v17, 16 }
 0x31b   : > { %v4076_v21 = vpop.xlane.xlu0 %1694  ;;  %v4078_v22 = vcvt.s32.f32 %v1857_v19 }
 0x31c   : > { %5002 = vst [vmem:[#allocation20_spill] sm:$0xff] %v4076_v21  ;;  %vm1754_vm5 = vcmp.ge.f32.partialorder %v3801_v38, %v4076_v21 }
 0x31d   : > { %v4083_v24 = vsel %vm1754_vm5, %v3769_v23, 128  ;;  %v4085_v26 = vpop.xlane.xlu1 %1696  ;;  %1860 = vmin.xlane.f32.xlu1 %v4078_v22 }
 0x31e   : > { %5003 = vst [vmem:[#allocation21_spill] sm:$0xff] %v4085_v26  ;;  %vm1755_vm6 = vcmp.ge.f32.partialorder %v3808_v45, %v4085_v26  ;;  %v1871_v41 = vshra.s32 %v4083_v24, 16 }
 0x31f   : > { %v4092_v29 = vsel %vm1755_vm6, %v3769_v23, 128 }
 0x320   : > { %v4094_v30 = vcvt.s32.f32 %v1871_v41  ;;  %v1885_v32 = vshra.s32 %v4092_v29, 16 }
 0x322   : > { %1874 = vmin.xlane.f32.xlu0 %v4094_v30  ;;  %v4098_v38 = vcvt.s32.f32 %v1885_v32 }
 0x323   : > { %v4100_v37 = vpop.xlane.xlu0 %1698 }
 0x324   : > { %5004 = vst [vmem:[#allocation22_spill] sm:$0xff] %v4100_v37  ;;  %vm1756_vm7 = vcmp.ge.f32.partialorder %v3819_v3, %v4100_v37  ;;  %1888 = vmin.xlane.f32.xlu1 %v4098_v38 }
 0x325   : > { %v4106_v45 = vsel %vm1756_vm7, %v3769_v23, 128  ;;  %v4108_v39 = vpop.xlane.xlu1 %1700 }
 0x326   : > { %5005 = vst [vmem:[#allocation23_spill] sm:$0xff] %v4108_v39  ;;  %vm1757_vm8 = vcmp.ge.f32.partialorder %v3826_v8, %v4108_v39  ;;  %v1899_v44 = vshra.s32 %v4106_v45, 16 }
 0x327   : > { %v4114_v46 = vsel %vm1757_vm8, %v3769_v23, 128 }
 0x328   : > { %v4116_v50 = vcvt.s32.f32 %v1899_v44  ;;  %v1913_v51 = vshra.s32 %v4114_v46, 16 }
 0x32a   : > { %1902 = vmin.xlane.f32.xlu0 %v4116_v50  ;;  %v4120_v3 = vcvt.s32.f32 %v1913_v51 }
 0x32c   : > { %v4122_v52 = vpop.xlane.xlu0 %1702  ;;  %1916 = vmin.xlane.f32.xlu1 %v4120_v3 }
 0x32d   : > { %5006 = vst [vmem:[#allocation24_spill] sm:$0xff] %v4122_v52  ;;  %vm1758_vm9 = vcmp.ge.f32.partialorder %v3837_v31, %v4122_v52 }
 0x32e   : > { %v4128_v8 = vsel %vm1758_vm9, %v3769_v23, 128  ;;  %v4130_v42 = vpop.xlane.xlu1 %1704 }
 0x32f   : > { %5007 = vst [vmem:[#allocation25_spill] sm:$0xff] %v4130_v42  ;;  %vm1759_vm10 = vcmp.ge.f32.partialorder %v3845_v36, %v4130_v42  ;;  %v1927_v40 = vshra.s32 %v4128_v8, 16 }
 0x330   : > { %v4136_v57 = vsel %vm1759_vm10, %v3769_v23, 128 }
 0x331   : > { %v4138_v59 = vcvt.s32.f32 %v1927_v40  ;;  %v1941_v2 = vshra.s32 %v4136_v57, 16 }
 0x333   : > { %1930 = vmin.xlane.f32.xlu0 %v4138_v59  ;;  %v4142_v31 = vcvt.s32.f32 %v1941_v2 }
 0x334   : > { %v4144_v9 = vpop.xlane.xlu0 %1706 }
 0x335   : > { %5008 = vst [vmem:[#allocation26_spill] sm:$0xff] %v4144_v9  ;;  %vm1760_vm11 = vcmp.ge.f32.partialorder %v3855_v62, %v4144_v9  ;;  %1944 = vmin.xlane.f32.xlu1 %v4142_v31 }
 0x336   : > { %v4150_v36 = vsel %vm1760_vm11, %v3769_v23, 128  ;;  %v4152_v13 = vpop.xlane.xlu1 %1708 }
 0x337   : > { %5009 = vst [vmem:[#allocation27_spill] sm:$0xff] %v4152_v13  ;;  %vm1761_vm12 = vcmp.ge.f32.partialorder %v3863_v5, %v4152_v13  ;;  %v1955_v15 = vshra.s32 %v4150_v36, 16 }
 0x338   : > { %v4158_v19 = vsel %vm1761_vm12, %v3769_v23, 128 }
 0x339   : > { %v4160_v41 = vcvt.s32.f32 %v1955_v15  ;;  %v1969_v32 = vshra.s32 %v4158_v19, 16 }
 0x33b   : > { %1958 = vmin.xlane.f32.xlu0 %v4160_v41  ;;  %v4164_v62 = vcvt.s32.f32 %v1969_v32 }
 0x33d   : > { %v4166_v44 = vpop.xlane.xlu0 %1710  ;;  %1972 = vmin.xlane.f32.xlu1 %v4164_v62 }
 0x33e   : > { %5010 = vst [vmem:[#allocation28_spill] sm:$0xff] %v4166_v44  ;;  %vm1762_vm13 = vcmp.ge.f32.partialorder %v3873_v28, %v4166_v44 }
 0x33f   : > { %v4172_v5 = vsel %vm1762_vm13, %v3769_v23, 128  ;;  %v4174_v51 = vpop.xlane.xlu1 %1712 }
 0x340   : > { %5011 = vst [vmem:[#allocation29_spill] sm:$0xff] %v4174_v51  ;;  %vm1763_vm14 = vcmp.ge.f32.partialorder %v3881_v35, %v4174_v51  ;;  %v1983_v40 = vshra.s32 %v4172_v5, 16 }
 0x341   : > { %v4180_v2 = vsel %vm1763_vm14, %v3769_v23, 128 }
 0x342   : > { %v4182_v15 = vcvt.s32.f32 %v1983_v40  ;;  %v1997_v32 = vshra.s32 %v4180_v2, 16 }
 0x344   : > { %1986 = vmin.xlane.f32.xlu0 %v4182_v15  ;;  %v4186_v28 = vcvt.s32.f32 %v1997_v32 }
 0x345   : > { %v4188_v44 = vpop.xlane.xlu0 %1714 }
 0x346   : > { %5012 = vst [vmem:[#allocation30_spill] sm:$0xff] %v4188_v44  ;;  %vm1764_vm15 = vcmp.ge.f32.partialorder %v3891_v63, %v4188_v44  ;;  %2000 = vmin.xlane.f32.xlu1 %v4186_v28 }
 0x347   : > { %v4194_v35 = vsel %vm1764_vm15, %v3769_v23, 128  ;;  %v4196_v51 = vpop.xlane.xlu1 %1716 }
 0x348   : > { %5013 = vst [vmem:[#allocation31_spill] sm:$0xff] %v4196_v51  ;;  %vm1765_vm0 = vcmp.ge.f32.partialorder %v3899_v7, %v4196_v51  ;;  %v2011_v40 = vshra.s32 %v4194_v35, 16 }
 0x349   : > { %v4202_v32 = vsel %vm1765_vm0, %v3769_v23, 128 }
 0x34a   : > { %v4204_v13 = vcvt.s32.f32 %v2011_v40  ;;  %v2025_v9 = vshra.s32 %v4202_v32, 16 }
 0x34c   : > { %2014 = vmin.xlane.f32.xlu0 %v4204_v13  ;;  %v4208_v63 = vcvt.s32.f32 %v2025_v9 }
 0x34e   : > { %v4210_v44 = vpop.xlane.xlu0 %1718  ;;  %2028 = vmin.xlane.f32.xlu1 %v4208_v63 }
 0x34f   : > { %5014 = vst [vmem:[#allocation32_spill] sm:$0xff] %v4210_v44  ;;  %vm1766_vm1 = vcmp.ge.f32.partialorder %v3909_v34, %v4210_v44 }
 0x350   : > { %v4216_v7 = vsel %vm1766_vm1, %v3769_v23, 128  ;;  %v4218_v51 = vpop.xlane.xlu1 %1720 }
 0x351   : > { %5015 = vst [vmem:[#allocation33_spill] sm:$0xff] %v4218_v51  ;;  %vm1767_vm2 = vcmp.ge.f32.partialorder %v3917_v48, %v4218_v51  ;;  %v2039_v40 = vshra.s32 %v4216_v7, 16 }
 0x352   : > { %v4224_v9 = vsel %vm1767_vm2, %v3769_v23, 128 }
 0x353   : > { %v4226_v42 = vcvt.s32.f32 %v2039_v40  ;;  %v2053_v52 = vshra.s32 %v4224_v9, 16 }
 0x355   : > { %2042 = vmin.xlane.f32.xlu0 %v4226_v42  ;;  %v4230_v34 = vcvt.s32.f32 %v2053_v52 }
 0x356   : > { %v4232_v44 = vpop.xlane.xlu0 %1722 }
 0x357   : > { %5016 = vst [vmem:[#allocation34_spill] sm:$0xff] %v4232_v44  ;;  %vm1768_vm3 = vcmp.ge.f32.partialorder %v3927_v10, %v4232_v44  ;;  %2056 = vmin.xlane.f32.xlu1 %v4230_v34 }
 0x358   : > { %v4238_v48 = vsel %vm1768_vm3, %v3769_v23, 128  ;;  %v4240_v51 = vpop.xlane.xlu1 %1724 }
 0x359   : > { %5017 = vst [vmem:[#allocation35_spill] sm:$0xff] %v4240_v51  ;;  %vm1769_vm4 = vcmp.ge.f32.partialorder %v3936_v18, %v4240_v51  ;;  %v2067_v40 = vshra.s32 %v4238_v48, 16 }
 0x35a   : > { %v4246_v52 = vsel %vm1769_vm4, %v3769_v23, 128  ;;  %v4248_v39 = vpop.xlane.xlu0 %1726 }
 0x35b   : > { %5018 = vst [vmem:[#allocation36_spill] sm:$0xff] %v4248_v39  ;;  %v4250_v37 = vcvt.s32.f32 %v2067_v40  ;;  %vm1770_vm5 = vcmp.ge.f32.partialorder %v3945_v27, %v4248_v39  ;;  %v2081_v10 = vshra.s32 %v4246_v52, 16 }
 0x35c   : > { %v4256_v44 = vsel %vm1770_vm5, %v3769_v23, 128  ;;  %v4258_v26 = vpop.f32.mrb[32].mxu0 }
 0x35d   : > { %5019 = vst [vmem:[#allocation37_spill] sm:$0xff] %v4258_v26  ;;  %2070 = vmin.xlane.f32.xlu0 %v4250_v37  ;;  %v4261_v18 = vcvt.s32.f32 %v2081_v10  ;;  %v4263_v51 = vpop.f32.mrb[33].mxu0  ;;  %v2095_v21 = vshra.s32 %v4256_v44, 16 }
 0x35e   : > { %5020 = vst [vmem:[#allocation38_spill] sm:$0xff] %v4263_v51  ;;  %v4266_v40 = vpop.f32.mrb[34].mxu0 }
 0x35f   : > { %5021 = vst [vmem:[#allocation39_spill] sm:$0xff] %v4266_v40  ;;  %2084 = vmin.xlane.f32.xlu1 %v4261_v18  ;;  %v4269_v27 = vpop.f32.mrb[35].mxu0  ;;  %v4271_v39 = vcvt.s32.f32 %v2095_v21 }
 0x360   : > { %5022 = vst [vmem:[#allocation40_spill] sm:$0xff] %v4269_v27  ;;  %v4273_v14 = vpop.xlane.xlu1 %1728 }
 0x361   : > { %5023 = vst [vmem:[#allocation41_spill] sm:$0xff] %v4273_v14  ;;  %vm1771_vm6 = vcmp.ge.f32.partialorder %v3954_v56, %v4273_v14  ;;  %2098 = vmin.xlane.f32.xlu0 %v4271_v39 }
 0x362   : > { %v4279_v10 = vsel %vm1771_vm6, %v3769_v23, 128  ;;  %v4281_v4 = vpop.xlane.xlu0 %1730 }
 0x363   : > { %5024 = vst [vmem:[#allocation42_spill] sm:$0xff] %v4281_v4  ;;  %vm1772_vm7 = vcmp.ge.f32.partialorder %v3962_v1, %v4281_v4  ;;  %v2109_v40 = vshra.s32 %v4279_v10, 16 }
 0x364   : > { %v4287_v21 = vsel %vm1772_vm7, %v3769_v23, 128 }
 0x365   : > { %v4289_v26 = vcvt.s32.f32 %v2109_v40  ;;  %v2123_v58 = vshra.s32 %v4287_v21, 16 }
 0x367   : > { %2112 = vmin.xlane.f32.xlu1 %v4289_v26  ;;  %v4293_v56 = vcvt.s32.f32 %v2123_v58 }
 0x369   : > { %5025 = vst [vmem:[#allocation43_spill] sm:$0xff] %v4293_v56  ;;  %v4295_v14 = vpop.xlane.xlu1 %1732  ;;  %2126 = vmin.xlane.f32.xlu0 %v4293_v56 }
 0x36a   : > { %5026 = vst [vmem:[#allocation44_spill] sm:$0xff] %v4295_v14  ;;  %vm1773_vm8 = vcmp.ge.f32.partialorder %v3972_v33, %v4295_v14 }
 0x36b   : > { %v4301_v1 = vsel %vm1773_vm8, %v3769_v23, 128  ;;  %v4303_v4 = vpop.xlane.xlu0 %1734 }
 0x36c   : > { %5027 = vst [vmem:[#allocation45_spill] sm:$0xff] %v4303_v4  ;;  %vm1774_vm9 = vcmp.ge.f32.partialorder %v3981_v49, %v4303_v4  ;;  %v2137_v40 = vshra.s32 %v4301_v1, 16 }
 0x36d   : > { %v4309_v58 = vsel %vm1774_vm9, %v3769_v23, 128  ;;  %v4311_v27 = vpop.f32.mrb[36].mxu0 }
 0x36e   : > { %5028 = vst [vmem:[#allocation46_spill] sm:$0xff] %v4311_v27  ;;  %v4313_v54 = vcvt.s32.f32 %v2137_v40  ;;  %v4315_v51 = vpop.f32.mrb[37].mxu0  ;;  %v2151_v33 = vshra.s32 %v4309_v58, 16 }
 0x36f   : > { %5029 = vst [vmem:[#allocation47_spill] sm:$0xff] %v4315_v51  ;;  %v4318_v14 = vpop.f32.mrb[38].mxu0 }
 0x370   : > { %5030 = vst [vmem:[#allocation48_spill] sm:$0xff] %v4318_v14  ;;  %2140 = vmin.xlane.f32.xlu1 %v4313_v54  ;;  %v4321_v56 = vpop.f32.mrb[39].mxu0  ;;  %v4323_v49 = vcvt.s32.f32 %v2151_v33 }
 0x371   : > { %5031 = vst [vmem:[#allocation49_spill] sm:$0xff] %v4321_v56  ;;  %v4325_v4 = vpop.xlane.xlu1 %1736 }
 0x372   : > { %5032 = vst [vmem:[#allocation50_spill] sm:$0xff] %v4325_v4  ;;  %vm1775_vm10 = vcmp.ge.f32.partialorder %v3988_v60, %v4325_v4  ;;  %2154 = vmin.xlane.f32.xlu0 %v4323_v49 }
 0x373   : > { %v4331_v40 = vsel %vm1775_vm10, %v3769_v23, 128  ;;  %v4333_v27 = vpop.xlane.xlu0 %1738 }
 0x374   : > { %5033 = vst [vmem:[#allocation51_spill] sm:$0xff] %v4331_v40  ;;  %5034 = vst [vmem:[#allocation52_spill] sm:$0xff] %v4333_v27  ;;  %vm1776_vm11 = vcmp.ge.f32.partialorder %v3995_v6, %v4333_v27  ;;  %v2165_v14 = vshra.s32 %v4331_v40, 16 }
 0x375   : > { %v4339_v33 = vsel %vm1776_vm11, %v3769_v23, 128 }
 0x376   : > { %5035 = vst [vmem:[#allocation53_spill] sm:$0xff] %v4339_v33  ;;  %v4341_v56 = vcvt.s32.f32 %v2165_v14  ;;  %v2179_v51 = vshra.s32 %v4339_v33, 16 }
 0x378   : > { %5036 = vst [vmem:[#allocation54_spill] sm:$0xff] %v4341_v56  ;;  %2168 = vmin.xlane.f32.xlu1 %v4341_v56  ;;  %v4345_v60 = vcvt.s32.f32 %v2179_v51 }
 0x379   : > { %v4347_v4 = vpop.xlane.xlu1 %1740 }
 0x37a   : > { %5037 = vst [vmem:[#allocation55_spill] sm:$0xff] %v4345_v60  ;;  %5038 = vst [vmem:[#allocation56_spill] sm:$0xff] %v4347_v4  ;;  %vm1777_vm12 = vcmp.ge.f32.partialorder %v4002_v20, %v4347_v4  ;;  %2182 = vmin.xlane.f32.xlu0 %v4345_v60 }
 0x37b   : > { %v4353_v6 = vsel %vm1777_vm12, %v3769_v23, 128  ;;  %v4355_v27 = vpop.xlane.xlu0 %1742 }
 0x37c   : > { %5039 = vst [vmem:[#allocation57_spill] sm:$0xff] %v4355_v27  ;;  %vm1778_vm13 = vcmp.ge.f32.partialorder %v4009_v25, %v4355_v27  ;;  %v2193_v14 = vshra.s32 %v4353_v6, 16 }
 0x37d   : > { %v4361_v51 = vsel %vm1778_vm13, %v3769_v23, 128 }
 0x37e   : > { %v4363_v56 = vcvt.s32.f32 %v2193_v14  ;;  %v4365_v33 = vpop.f32.mrb[40].mxu0  ;;  %v2207_v20 = vshra.s32 %v4361_v51, 16 }
 0x37f   : > { %5040 = vst [vmem:[#allocation58_spill] sm:$0xff] %v4365_v33  ;;  %v4368_v4 = vpop.f32.mrb[41].mxu0 }
 0x380   : > { %5041 = vst [vmem:[#allocation59_spill] sm:$0xff] %v4368_v4  ;;  %2196 = vmin.xlane.f32.xlu1 %v4363_v56  ;;  %v4371_v60 = vpop.f32.mrb[42].mxu0  ;;  %v4373_v40 = vcvt.s32.f32 %v2207_v20 }
 0x381   : > { %5042 = vst [vmem:[#allocation60_spill] sm:$0xff] %v4371_v60  ;;  %v4375_v25 = vpop.f32.mrb[43].mxu0 }
 0x382   : > { %5043 = vst [vmem:[#allocation61_spill] sm:$0xff] %v4375_v25  ;;  %v4377_v27 = vpop.xlane.xlu1 %1744  ;;  %2210 = vmin.xlane.f32.xlu0 %v4373_v40 }
 0x383   : > { %5044 = vst [vmem:[#allocation62_spill] sm:$0xff] %v4377_v27  ;;  %vm1779_vm14 = vcmp.ge.f32.partialorder %v4016_v43, %v4377_v27 }
 0x384   : > { %v4383_v14 = vsel %vm1779_vm14, %v3769_v23, 128  ;;  %v4385_v33 = vpop.xlane.xlu0 %1746 }
 0x385   : > { %5045 = vst [vmem:[#allocation63_spill] sm:$0xff] %v4383_v14  ;;  %5046 = vst [vmem:[#allocation64_spill] sm:$0xff] %v4385_v33  ;;  %vm1780_vm15 = vcmp.ge.f32.partialorder %v4023_v47, %v4385_v33  ;;  %v2221_v20 = vshra.s32 %v4383_v14, 16 }
 0x386   : > { %v4391_v60 = vsel %vm1780_vm15, %v3769_v23, 128 }
 0x387   : > { %5047 = vst [vmem:[#allocation65_spill] sm:$0xff] %v4391_v60  ;;  %v4393_v25 = vcvt.s32.f32 %v2221_v20  ;;  %v2235_v4 = vshra.s32 %v4391_v60, 16 }
 0x389   : > { %5048 = vst [vmem:[#allocation66_spill] sm:$0xff] %v4393_v25  ;;  %2224 = vmin.xlane.f32.xlu1 %v4393_v25  ;;  %v4397_v43 = vcvt.s32.f32 %v2235_v4  ;;  %v4399_v27 = vpop.xlane.xlu1 %1748 }
 0x38a   : > { %5050 = vst [vmem:[#allocation68_spill] sm:$0xff] %v4399_v27  ;;  %vm1781_vm0 = vcmp.ge.f32.partialorder %v4030_v53, %v4399_v27  ;;  %v1814_v53 = vand.u32 65535, %v4040_v55  ;;  %v1842_v55 = vand.u32 65535, %v4061_v12 }
 0x38b   : > { %5049 = vst [vmem:[#allocation67_spill] sm:$0xff] %v4397_v43  ;;  %2238 = vmin.xlane.f32.xlu0 %v4397_v43  ;;  %v4405_v47 = vsel %vm1781_vm0, %v3769_v23, 128  ;;  %v1828_v43 = vand.u32 65535, %v4050_v0 }
 0x38c   : > { %5051 = vst [vmem:[#allocation69_spill] sm:$0xff] %v4405_v47  ;;  %v2249_v33 = vshra.s32 %v4405_v47, 16  ;;  %v1816_v23 = vcvt.s32.f32 %v1814_v53  ;;  %v1856_v53 = vand.u32 65535, %v4072_v17 }
 0x38e   : > { %v4408_v20 = vcvt.s32.f32 %v2249_v33  ;;  %v1858_v12 = vcvt.s32.f32 %v1856_v53 }
 0x38f   : > { %v4410_v14 = vpop.f32.mrb[44].mxu0 }
 0x390   : > { %5052 = vst [vmem:[#allocation70_spill] sm:$0xff] %v4408_v20  ;;  %5053 = vst [vmem:[#allocation71_spill] sm:$0xff] %v4410_v14  ;;  %v4412_v60 = vpop.f32.mrb[45].mxu0  ;;  %2252 = vmin.xlane.f32.xlu1 %v4408_v20 }
 0x391   : > { %5054 = vst [vmem:[#allocation72_spill] sm:$0xff] %v4412_v60  ;;  %v4415_v4 = vpop.f32.mrb[46].mxu0 }
 0x392   : > { %5055 = vst [vmem:[#allocation73_spill] sm:$0xff] %v4415_v4  ;;  %v4417_v25 = vpop.f32.mrb[47].mxu0 }
 0x393   : > { %5056 = vst [vmem:[#allocation74_spill] sm:$0xff] %v4417_v25  ;;  %v1830_v25 = vcvt.s32.f32 %v1828_v43 }
 0x39e   : > { %v4420_v27 = vpop.xlane.xlu0 %1818 }
 0x39f   : > { %vm1820_vm1 = vcmp.eq.f32.partialorder %v4047_v61, %v4420_v27 }
 0x3a0   : > { %v4425_v33 = vpop.f32.mrb[48].mxu0  ;;  %v1821_v14 = vsel %vm1820_vm1, %v1816_v23, inf  ;;  %v1844_v23 = vcvt.s32.f32 %v1842_v55 }
 0x3a1   : > { %v4427_v60 = vpop.f32.mrb[49].mxu0  ;;  %1822 = vmin.xlane.f32.xlu0 %v1821_v14 }
 0x3a2   : > { %v4429_v20 = vpop.f32.mrb[50].mxu0  ;;  %v4431_v4 = vpop.xlane.xlu1 %1832 }
 0x3a3   : > { %5057 = vst [vmem:[#allocation75_spill] sm:$0xff] %v4429_v20  ;;  %v4434_v47 = vpop.f32.mrb[51].mxu0  ;;  %vm1834_vm2 = vcmp.eq.f32.partialorder %v4058_v11, %v4431_v4  ;;  %v1870_v11 = vand.u32 65535, %v4083_v24 }
 0x3a4   : > { %v1835_v0 = vsel %vm1834_vm2, %v1830_v25, inf }
 0x3a5   : > { %1836 = vmin.xlane.f32.xlu1 %v1835_v0  ;;  %v1884_v0 = vand.u32 65535, %v4092_v29  ;;  %v1872_v17 = vcvt.s32.f32 %v1870_v11  ;;  %v1898_v29 = vand.u32 65535, %v4106_v45 }
 0x3a6   : > { %v4438_v61 = vpop.xlane.xlu0 %1846 }
 0x3a7   : > { %vm1848_vm3 = vcmp.eq.f32.partialorder %v4069_v16, %v4438_v61 }
 0x3a8   : > { %v1849_v14 = vsel %vm1848_vm3, %v1844_v23, inf }
 0x3a9   : > { %1850 = vmin.xlane.f32.xlu0 %v1849_v14  ;;  %v1886_v14 = vcvt.s32.f32 %v1884_v0 }
 0x3aa   : > { %v4443_v43 = vpop.xlane.xlu1 %1860 }
 0x3ab   : > { %vm1862_vm4 = vcmp.eq.f32.partialorder %v4078_v22, %v4443_v43 }
 0x3ac   : > { %v1863_v25 = vsel %vm1862_vm4, %v1858_v12, inf }
 0x3ad   : > { %1864 = vmin.xlane.f32.xlu1 %v1863_v25  ;;  %v1900_v25 = vcvt.s32.f32 %v1898_v29 }
 0x3af   : > { %v4449_v55 = vpop.xlane.xlu0 %1874 }
 0x3b0   : > { %vm1876_vm5 = vcmp.eq.f32.partialorder %v4094_v30, %v4449_v55  ;;  %v1912_v30 = vand.u32 65535, %v4114_v46  ;;  %v1940_v46 = vand.u32 65535, %v4136_v57 }
 0x3b1   : > { %v4453_v16 = vpop.f32.mrb[52].mxu0  ;;  %v4455_v23 = vpop.xlane.xlu1 %1888  ;;  %v1877_v53 = vsel %vm1876_vm5, %v1872_v17, inf }
 0x3b2   : > { %v4457_v20 = vpop.f32.mrb[53].mxu0  ;;  %1878 = vmin.xlane.f32.xlu0 %v1877_v53  ;;  %vm1890_vm6 = vcmp.eq.f32.partialorder %v4098_v38, %v4455_v23  ;;  %v1914_v38 = vcvt.s32.f32 %v1912_v30  ;;  %v1926_v53 = vand.u32 65535, %v4128_v8 }
 0x3b3   : > { %v4461_v22 = vpop.f32.mrb[54].mxu0  ;;  %v1891_v24 = vsel %vm1890_vm6, %v1886_v14, inf }
 0x3b4   : > { %v4464_v12 = vpop.f32.mrb[55].mxu0  ;;  %1892 = vmin.xlane.f32.xlu1 %v1891_v24  ;;  %v1928_v24 = vcvt.s32.f32 %v1926_v53 }
 0x3b7   : > { %v4467_v11 = vpop.xlane.xlu0 %1902 }
 0x3b8   : > { %vm1904_vm7 = vcmp.eq.f32.partialorder %v4116_v50, %v4467_v11 }
 0x3b9   : > { %v4471_v0 = vpop.xlane.xlu1 %1916  ;;  %v1905_v17 = vsel %vm1904_vm7, %v1900_v25, inf }
 0x3ba   : > { %1906 = vmin.xlane.f32.xlu0 %v1905_v17  ;;  %vm1918_vm8 = vcmp.eq.f32.partialorder %v4120_v3, %v4471_v0  ;;  %v1942_v3 = vcvt.s32.f32 %v1940_v46 }
 0x3bb   : > { %v1919_v45 = vsel %vm1918_vm8, %v1914_v38, inf  ;;  %v1954_v38 = vand.u32 65535, %v4150_v36  ;;  %v1982_v36 = vand.u32 65535, %v4172_v5 }
 0x3bc   : > { %1920 = vmin.xlane.f32.xlu1 %v1919_v45 }
 0x3bd   : > { %v1956_v53 = vcvt.s32.f32 %v1954_v38 }
 0x3c0   : > { %v4477_v14 = vpop.xlane.xlu0 %1930 }
 0x3c1   : > { %v4479_v29 = vpop.f32.mrb[56].mxu0  ;;  %vm1932_vm9 = vcmp.eq.f32.partialorder %v4138_v59, %v4477_v14  ;;  %v1968_v59 = vand.u32 65535, %v4158_v19  ;;  %v1996_v19 = vand.u32 65535, %v4180_v2 }
 0x3c2   : > { %v4483_v50 = vpop.f32.mrb[57].mxu0  ;;  %v4485_v30 = vpop.xlane.xlu1 %1944  ;;  %v1933_v25 = vsel %vm1932_vm9, %v1928_v24, inf }
 0x3c3   : > { %v4487_v17 = vpop.f32.mrb[58].mxu0  ;;  %1934 = vmin.xlane.f32.xlu0 %v1933_v25  ;;  %vm1946_vm10 = vcmp.eq.f32.partialorder %v4142_v31, %v4485_v30  ;;  %v1970_v25 = vcvt.s32.f32 %v1968_v59 }
 0x3c4   : > { %v4491_v8 = vpop.f32.mrb[59].mxu0  ;;  %v1947_v57 = vsel %vm1946_vm10, %v1942_v3, inf }
 0x3c5   : > { %1948 = vmin.xlane.f32.xlu1 %v1947_v57  ;;  %v1984_v57 = vcvt.s32.f32 %v1982_v36 }
 0x3c8   : > { %v4495_v45 = vpop.xlane.xlu0 %1958 }
 0x3c9   : > { %vm1960_vm11 = vcmp.eq.f32.partialorder %v4160_v41, %v4495_v45 }
 0x3ca   : > { %v4499_v46 = vpop.xlane.xlu1 %1972  ;;  %v1961_v24 = vsel %vm1960_vm11, %v1956_v53, inf }
 0x3cb   : > { %1962 = vmin.xlane.f32.xlu0 %v1961_v24  ;;  %vm1974_vm12 = vcmp.eq.f32.partialorder %v4164_v62, %v4499_v46  ;;  %v1998_v62 = vcvt.s32.f32 %v1996_v19 }
 0x3cc   : > { %v1975_v31 = vsel %vm1974_vm12, %v1970_v25, inf  ;;  %v2010_v25 = vand.u32 65535, %v4194_v35  ;;  %v2038_v35 = vand.u32 65535, %v4216_v7  ;;  %v2080_v7 = vand.u32 65535, %v4246_v52 }
 0x3cd   : > { %1976 = vmin.xlane.f32.xlu1 %v1975_v31 }
 0x3ce   : > { %v2012_v36 = vcvt.s32.f32 %v2010_v25 }
 0x3d1   : > { %v4505_v3 = vpop.xlane.xlu0 %1986  ;;  %v4507_v38 = vpop.f32.mrb[60].mxu0 }
 0x3d2   : > { %vm1988_vm13 = vcmp.eq.f32.partialorder %v4182_v15, %v4505_v3  ;;  %v4511_v41 = vpop.f32.mrb[61].mxu0  ;;  %v2024_v15 = vand.u32 65535, %v4202_v32  ;;  %v2052_v32 = vand.u32 65535, %v4224_v9 }
 0x3d3   : > { %v4513_v59 = vpop.xlane.xlu1 %2000  ;;  %v1989_v53 = vsel %vm1988_vm13, %v1984_v57, inf  ;;  %v4515_v24 = vpop.f32.mrb[62].mxu0 }
 0x3d4   : > { %1990 = vmin.xlane.f32.xlu0 %v1989_v53  ;;  %vm2002_vm14 = vcmp.eq.f32.partialorder %v4186_v28, %v4513_v59  ;;  %v4519_v5 = vpop.f32.mrb[63].mxu0  ;;  %v2026_v53 = vcvt.s32.f32 %v2024_v15  ;;  %v2054_v15 = vcvt.s32.f32 %v2052_v32  ;;  %v2108_v32 = vand.u32 65535, %v4279_v10 }
 0x3d5   : > { %v2003_v2 = vsel %vm2002_vm14, %v1998_v62, inf  ;;  %v2136_v10 = vand.u32 65535, %v4301_v1  ;;  %v5060_v1 = vld [vmem:[#allocation53_spill] sm:$0xff] }
 0x3d6   : > { %2004 = vmin.xlane.f32.xlu1 %v2003_v2  ;;  %v2040_v2 = vcvt.s32.f32 %v2038_v35  ;;  %v2082_v35 = vcvt.s32.f32 %v2080_v7 }
 0x3d9   : > { %v4523_v31 = vpop.xlane.xlu0 %2014 }
 0x3da   : > { %vm2016_vm15 = vcmp.eq.f32.partialorder %v4204_v13, %v4523_v31 }
 0x3db   : > { %v4527_v19 = vpop.xlane.xlu1 %2028  ;;  %v2017_v57 = vsel %vm2016_vm15, %v2012_v36, inf  ;;  %v2066_v36 = vand.u32 65535, %v4238_v48 }
 0x3dc   : > { %2018 = vmin.xlane.f32.xlu0 %v2017_v57  ;;  %vm2030_vm0 = vcmp.eq.f32.partialorder %v4208_v63, %v4527_v19 }
 0x3dd   : > { %v2031_v28 = vsel %vm2030_vm0, %v2026_v53, inf  ;;  %v2068_v57 = vcvt.s32.f32 %v2066_v36  ;;  %v2094_v53 = vand.u32 65535, %v4256_v44  ;;  %v5058_v36 = vld [vmem:[#allocation43_spill] sm:$0xff] }
 0x3de   : > { %2032 = vmin.xlane.f32.xlu1 %v2031_v28 }
 0x3df   : > { %v2096_v52 = vcvt.s32.f32 %v2094_v53 }
 0x3e2   : > { %v4533_v62 = vpop.xlane.xlu0 %2042 }
 0x3e3   : > { %vm2044_vm1 = vcmp.eq.f32.partialorder %v4226_v42, %v4533_v62 }
 0x3e4   : > { %v4537_v13 = vpop.xlane.xlu1 %2056  ;;  %v2045_v25 = vsel %vm2044_vm1, %v2040_v2, inf }
 0x3e5   : > { %2046 = vmin.xlane.f32.xlu0 %v2045_v25  ;;  %vm2058_vm2 = vcmp.eq.f32.partialorder %v4230_v34, %v4537_v13  ;;  %v2110_v25 = vcvt.s32.f32 %v2108_v32 }
 0x3e6   : > { %v2059_v63 = vsel %vm2058_vm2, %v2054_v15, inf }
 0x3e7   : > { %2060 = vmin.xlane.f32.xlu1 %v2059_v63 }
 0x3ea   : > { %v4543_v9 = vpop.xlane.xlu0 %2070 }
 0x3eb   : > { %vm2072_vm3 = vcmp.eq.f32.partialorder %v4250_v37, %v4543_v9  ;;  %v2122_v37 = vand.u32 65535, %v4287_v21  ;;  %v2150_v21 = vand.u32 65535, %v4309_v58  ;;  %v2178_v58 = vand.u32 65535, %v5060_v1 }
 0x3ec   : > { %v4548_v42 = vpop.xlane.xlu1 %2084  ;;  %v2073_v28 = vsel %vm2072_vm3, %v2068_v57, inf  ;;  %v2138_v57 = vcvt.s32.f32 %v2136_v10 }
 0x3ed   : > { %2074 = vmin.xlane.f32.xlu0 %v2073_v28  ;;  %vm2086_vm4 = vcmp.eq.f32.partialorder %v4261_v18, %v4548_v42  ;;  %v2124_v63 = vcvt.s32.f32 %v2122_v37  ;;  %v2152_v28 = vcvt.s32.f32 %v2150_v21  ;;  %v5061_v37 = vld [vmem:[#allocation54_spill] sm:$0xff] }
 0x3ee   : > { %v2087_v34 = vsel %vm2086_vm4, %v2082_v35, inf  ;;  %v4552_v48 = vpop.xlane.xlu0 %2098 }
 0x3ef   : > { %2088 = vmin.xlane.f32.xlu1 %v2087_v34  ;;  %vm2100_vm5 = vcmp.eq.f32.partialorder %v4271_v39, %v4552_v48  ;;  %v5059_v34 = vld [vmem:[#allocation51_spill] sm:$0xff] }
 0x3f0   : > { %v2101_v44 = vsel %vm2100_vm5, %v2096_v52, inf  ;;  %v2164_v52 = vand.u32 65535, %v5059_v34 }
 0x3f1   : > { %2102 = vmin.xlane.f32.xlu0 %v2101_v44 }
 0x3f2   : > { %v2166_v32 = vcvt.s32.f32 %v2164_v52  ;;  %v5064_v52 = vld [vmem:[#allocation65_spill] sm:$0xff] }
 0x3f4   : > { %v4558_v2 = vpop.xlane.xlu1 %2112 }
 0x3f5   : > { %vm2114_vm6 = vcmp.eq.f32.partialorder %v4289_v26, %v4558_v2 }
 0x3f6   : > { %v2115_v18 = vsel %vm2114_vm6, %v2110_v25, inf  ;;  %v4562_v15 = vpop.xlane.xlu0 %2126 }
 0x3f7   : > { %2116 = vmin.xlane.f32.xlu1 %v2115_v18  ;;  %vm2128_vm7 = vcmp.eq.f32.partialorder %v5058_v36, %v4562_v15  ;;  %v2180_v18 = vcvt.s32.f32 %v2178_v58  ;;  %v2192_v36 = vand.u32 65535, %v4353_v6  ;;  %v5063_v6 = vld [vmem:[#allocation63_spill] sm:$0xff] }
 0x3f8   : > { %v2129_v39 = vsel %vm2128_vm7, %v2124_v63, inf  ;;  %v5062_v63 = vld [vmem:[#allocation55_spill] sm:$0xff]  ;;  %v2220_v34 = vand.u32 65535, %v5063_v6 }
 0x3f9   : > { %2130 = vmin.xlane.f32.xlu0 %v2129_v39  ;;  %v2206_v39 = vand.u32 65535, %v4361_v51  ;;  %v2194_v21 = vcvt.s32.f32 %v2192_v36  ;;  %v2234_v51 = vand.u32 65535, %v5064_v52 }
 0x3fa   : > { %v2222_v58 = vcvt.s32.f32 %v2220_v34  ;;  %v1839_v34 = vcvt.f32.s32 %v4431_v4 }
 0x3fd   : > { %v4568_v7 = vpop.xlane.xlu1 %2140 }
 0x3fe   : > { %vm2142_vm8 = vcmp.eq.f32.partialorder %v4313_v54, %v4568_v7 }
 0x3ff   : > { %v2143_v26 = vsel %vm2142_vm8, %v2138_v57, inf  ;;  %v4572_v53 = vpop.xlane.xlu0 %2154 }
 0x400   : > { %2144 = vmin.xlane.f32.xlu1 %v2143_v26  ;;  %vm2156_vm9 = vcmp.eq.f32.partialorder %v4323_v49, %v4572_v53 }
 0x401   : > { %v2157_v35 = vsel %vm2156_vm9, %v2152_v28, inf  ;;  %v2208_v28 = vcvt.s32.f32 %v2206_v39 }
 0x402   : > { %2158 = vmin.xlane.f32.xlu0 %v2157_v35 }
 0x405   : > { %v4578_v44 = vpop.xlane.xlu1 %2168 }
 0x406   : > { %vm2170_vm10 = vcmp.eq.f32.partialorder %v5061_v37, %v4578_v44 }
 0x407   : > { %v2171_v54 = vsel %vm2170_vm10, %v2166_v32, inf  ;;  %v4582_v25 = vpop.xlane.xlu0 %2182  ;;  %v5065_v32 = vld [vmem:[#allocation66_spill] sm:$0xff] }
 0x408   : > { %2172 = vmin.xlane.f32.xlu1 %v2171_v54  ;;  %vm2184_vm11 = vcmp.eq.f32.partialorder %v5062_v63, %v4582_v25  ;;  %v2236_v54 = vcvt.s32.f32 %v2234_v51  ;;  %v5067_v63 = vld [vmem:[#allocation69_spill] sm:$0xff]  ;;  %v5069_v51 = vld [vmem:[#allocation15_spill] sm:$0xff] }
 0x409   : > { %v2185_v49 = vsel %vm2184_vm11, %v2180_v18, inf  ;;  %v5066_v18 = vld [vmem:[#allocation67_spill] sm:$0xff]  ;;  %vm2294_vm1 = vcmp.eq.s32.totalorder %v5069_v51, 4  ;;  %vm2327_vm2 = vcmp.eq.s32.totalorder %v5069_v51, 5 }
 0x40a   : > { %2186 = vmin.xlane.f32.xlu0 %v2185_v49  ;;  %v2248_v49 = vand.u32 65535, %v5067_v63  ;;  %v5070_v63 = vld [vmem:[#allocation38_spill] sm:$0xff] }
 0x40c   : > { %v2250_v39 = vcvt.s32.f32 %v2248_v49 }
 0x40d   : > { %v4588_v10 = vpop.xlane.xlu1 %2196 }
 0x40e   : > { %vm2198_vm12 = vcmp.eq.f32.partialorder %v4363_v56, %v4588_v10 }
 0x40f   : > { %v2199_v57 = vsel %vm2198_vm12, %v2194_v21, inf  ;;  %v4592_v26 = vpop.xlane.xlu0 %2210  ;;  %v5068_v21 = vld [vmem:[#allocation70_spill] sm:$0xff] }
 0x410   : > { %2200 = vmin.xlane.f32.xlu1 %v2199_v57  ;;  %vm2212_vm13 = vcmp.eq.f32.partialorder %v4373_v40, %v4592_v26 }
 0x411   : > { %v2213_v35 = vsel %vm2212_vm13, %v2208_v28, inf  ;;  %v1825_v28 = vcvt.f32.s32 %v4420_v27  ;;  %v5071_v27 = vld [vmem:[#allocation16_spill] sm:$0xff] }
 0x412   : > { %2214 = vmin.xlane.f32.xlu0 %v2213_v35  ;;  %v2295_v49 = vsel %vm2294_vm1, %v5071_v27, %v5070_v63  ;;  %v5074_v63 = vld [vmem:[#allocation37_spill] sm:$0xff] }
 0x413   : > { %v1826_v6 = vshll.u32 %v1825_v28, 16  ;;  %v1867_v28 = vcvt.f32.s32 %v4443_v43  ;;  %v5075_v43 = vld [vmem:[#allocation18_spill] sm:$0xff] }
 0x414   : > { %v2297_v27 = vsel %vm2294_vm1, %v5075_v43, %v5074_v63  ;;  %v5078_v63 = vld [vmem:[#allocation47_spill] sm:$0xff]  ;;  %v5079_v43 = vld [vmem:[#allocation20_spill] sm:$0xff] }
 0x416   : > { %v4598_v1 = vpop.xlane.xlu1 %2224 }
 0x417   : > { %vm2226_vm14 = vcmp.eq.f32.partialorder %v5065_v32, %v4598_v1 }
 0x418   : > { %v2227_v56 = vsel %vm2226_vm14, %v2222_v58, inf  ;;  %v4602_v37 = vpop.xlane.xlu0 %2238 }
 0x419   : > { %2228 = vmin.xlane.f32.xlu1 %v2227_v56  ;;  %vm2240_vm15 = vcmp.eq.f32.partialorder %v5066_v18, %v4602_v37  ;;  %v1840_v56 = vshll.u32 %v1839_v34, 16  ;;  %v5073_v34 = vld [vmem:[#allocation17_spill] sm:$0xff] }
 0x41a   : > { %v2241_v40 = vsel %vm2240_vm15, %v2236_v54, inf  ;;  %v1853_v54 = vcvt.f32.s32 %v4438_v61  ;;  %v5072_v61 = vld [vmem:[#allocation40_spill] sm:$0xff] }
 0x41b   : > { %2242 = vmin.xlane.f32.xlu0 %v2241_v40 }
 0x41d   : > { %v4607_v36 = vpop.xlane.xlu1 %2252 }
 0x41e   : > { %vm2254_vm0 = vcmp.eq.f32.partialorder %v5068_v21, %v4607_v36 }
 0x41f   : > { %v2255_v57 = vsel %vm2254_vm0, %v2250_v39, inf }
 0x420   : > { %2256 = vmin.xlane.f32.xlu1 %v2255_v57  ;;  %v1854_v57 = vshll.u32 %v1853_v54, 16 }
 0x42e   : > { %v1823_v35 = vpop.xlane.xlu0 %1822 }
 0x42f   : > { %v1824_v52 = vcvt.f32.s32 %v1823_v35 }
 0x431   : > { %v1827_v58 = vadd.s32 %v1826_v6, %v1824_v52  ;;  %v2296_v52 = vsel %vm2294_vm1, %v5073_v34, %v5072_v61 }
 0x432   : > { %v1837_v32 = vpop.xlane.xlu1 %1836 }
 0x433   : > { %v2262_v18 = vcvt.s32.f32 %v1827_v58  ;;  %v1838_v40 = vcvt.f32.s32 %v1837_v32 }
 0x435   : > { %v2328_v4 = vsel %vm2327_vm2, %v2262_v18, %v2295_v49  ;;  %v1841_v39 = vadd.s32 %v1840_v56, %v1838_v40  ;;  %v1868_v56 = vshll.u32 %v1867_v28, 16  ;;  %v1881_v49 = vcvt.f32.s32 %v4449_v55  ;;  %v5076_v28 = vld [vmem:[#allocation39_spill] sm:$0xff] }
 0x436   : > { %2392 = vst [vmem:[%s3779_s10 + $0x8] sm:$0xff] %v2328_v4  ;;  %v1851_v21 = vpop.xlane.xlu0 %1850 }
 0x437   : > { %v2263_v35 = vcvt.s32.f32 %v1841_v39  ;;  %v1852_v6 = vcvt.f32.s32 %v1851_v21  ;;  %v1895_v21 = vcvt.f32.s32 %v4455_v23  ;;  %v1882_v34 = vshll.u32 %v1881_v49, 16 }
 0x438   : > { %v1923_v49 = vcvt.f32.s32 %v4471_v0 }
 0x439   : > { %v2329_v58 = vsel %vm2327_vm2, %v2263_v35, %v2296_v52  ;;  %v1855_v32 = vadd.s32 %v1854_v57, %v1852_v6  ;;  %v5077_v6 = vld [vmem:[#allocation19_spill] sm:$0xff] }
 0x43a   : > { %2393 = vst [vmem:[%s3779_s10 + $0x18] sm:$0xff] %v2329_v58  ;;  %v1865_v18 = vpop.xlane.xlu1 %1864  ;;  %v2298_v61 = vsel %vm2294_vm1, %v5077_v6, %v5076_v28  ;;  %v1924_v0 = vshll.u32 %v1923_v49, 16 }
 0x43b   : > { %v2264_v40 = vcvt.s32.f32 %v1855_v32  ;;  %v1866_v54 = vcvt.f32.s32 %v1865_v18  ;;  %v1896_v32 = vshll.u32 %v1895_v21, 16  ;;  %v5080_v21 = vld [vmem:[#allocation49_spill] sm:$0xff] }
 0x43d   : > { %v2330_v4 = vsel %vm2327_vm2, %v2264_v40, %v2297_v27  ;;  %v1869_v39 = vadd.s32 %v1868_v56, %v1866_v54  ;;  %v1909_v56 = vcvt.f32.s32 %v4467_v11  ;;  %v2299_v27 = vsel %vm2294_vm1, %v5079_v43, %v5078_v63  ;;  %v5084_v43 = vld [vmem:[#allocation48_spill] sm:$0xff] }
 0x43e   : > { %2394 = vst [vmem:[%s3779_s10 + $0x28] sm:$0xff] %v2330_v4 }
 0x43f   : > { %v2265_v57 = vcvt.s32.f32 %v1869_v39  ;;  %v1879_v35 = vpop.xlane.xlu0 %1878  ;;  %v1910_v28 = vshll.u32 %v1909_v56, 16  ;;  %v1937_v56 = vcvt.f32.s32 %v4477_v14 }
 0x440   : > { %v1880_v52 = vcvt.f32.s32 %v1879_v35 }
 0x441   : > { %v2331_v55 = vsel %vm2327_vm2, %v2265_v57, %v2298_v61  ;;  %v1893_v58 = vpop.xlane.xlu1 %1892  ;;  %v5081_v57 = vld [vmem:[#allocation21_spill] sm:$0xff] }
 0x442   : > { %2395 = vst [vmem:[%s3779_s10 + $0x38] sm:$0xff] %v2331_v55  ;;  %v1883_v18 = vadd.s32 %v1882_v34, %v1880_v52  ;;  %v1894_v23 = vcvt.f32.s32 %v1893_v58  ;;  %v2300_v35 = vsel %vm2294_vm1, %v5081_v57, %v5080_v21  ;;  %v1938_v57 = vshll.u32 %v1937_v56, 16 }
 0x444   : > { %v2266_v40 = vcvt.s32.f32 %v1883_v18  ;;  %v1897_v54 = vadd.s32 %v1896_v32, %v1894_v23  ;;  %v5082_v18 = vld [vmem:[#allocation46_spill] sm:$0xff] }
 0x445   : > { %v5083_v23 = vld [vmem:[#allocation22_spill] sm:$0xff] }
 0x446   : > { %v2332_v4 = vsel %vm2327_vm2, %v2266_v40, %v2299_v27  ;;  %v2267_v39 = vcvt.s32.f32 %v1897_v54  ;;  %v2301_v40 = vsel %vm2294_vm1, %v5083_v23, %v5082_v18  ;;  %v5085_v27 = vld [vmem:[#allocation23_spill] sm:$0xff]  ;;  %v5088_v23 = vld [vmem:[#allocation61_spill] sm:$0xff] }
 0x447   : > { %2396 = vst [vmem:[%s3779_s10 + $0x48] sm:$0xff] %v2332_v4  ;;  %v1907_v11 = vpop.xlane.xlu0 %1906  ;;  %v2302_v49 = vsel %vm2294_vm1, %v5085_v27, %v5084_v43  ;;  %v1951_v4 = vcvt.f32.s32 %v4485_v30  ;;  %v5087_v30 = vld [vmem:[#allocation24_spill] sm:$0xff] }
 0x448   : > { %v2333_v6 = vsel %vm2327_vm2, %v2267_v39, %v2300_v35  ;;  %v1908_v61 = vcvt.f32.s32 %v1907_v11 }
 0x449   : > { %2397 = vst [vmem:[%s3779_s10 + $0x58] sm:$0xff] %v2333_v6  ;;  %v1921_v34 = vpop.xlane.xlu1 %1920  ;;  %v1952_v11 = vshll.u32 %v1951_v4, 16 }
 0x44a   : > { %v1911_v52 = vadd.s32 %v1910_v28, %v1908_v61  ;;  %v1922_v55 = vcvt.f32.s32 %v1921_v34  ;;  %v1965_v61 = vcvt.f32.s32 %v4495_v45 }
 0x44c   : > { %v2268_v58 = vcvt.s32.f32 %v1911_v52  ;;  %v1925_v32 = vadd.s32 %v1924_v0, %v1922_v55  ;;  %v5086_v52 = vld [vmem:[#allocation59_spill] sm:$0xff] }
 0x44d   : > { %v2303_v55 = vsel %vm2294_vm1, %v5087_v30, %v5086_v52  ;;  %v2007_v52 = vcvt.f32.s32 %v4513_v59  ;;  %v5095_v59 = vld [vmem:[#allocation28_spill] sm:$0xff] }
 0x44e   : > { %v2334_v54 = vsel %vm2327_vm2, %v2268_v58, %v2301_v40  ;;  %v2269_v63 = vcvt.s32.f32 %v1925_v32  ;;  %v1979_v58 = vcvt.f32.s32 %v4499_v46  ;;  %v5089_v40 = vld [vmem:[#allocation25_spill] sm:$0xff] }
 0x44f   : > { %2398 = vst [vmem:[%s3779_s10 + $0x68] sm:$0xff] %v2334_v54  ;;  %v2304_v56 = vsel %vm2294_vm1, %v5089_v40, %v5088_v23  ;;  %v1966_v54 = vshll.u32 %v1965_v61, 16  ;;  %v5092_v61 = vld [vmem:[#allocation60_spill] sm:$0xff] }
 0x450   : > { %v2335_v39 = vsel %vm2327_vm2, %v2269_v63, %v2302_v49  ;;  %v1935_v21 = vpop.xlane.xlu0 %1934  ;;  %v1980_v46 = vshll.u32 %v1979_v58, 16 }
 0x451   : > { %2399 = vst [vmem:[%s3779_s10 + $0x78] sm:$0xff] %v2335_v39  ;;  %v1936_v14 = vcvt.f32.s32 %v1935_v21 }
 0x452   : > { %v1949_v35 = vpop.xlane.xlu1 %1948 }
 0x453   : > { %v1939_v28 = vadd.s32 %v1938_v57, %v1936_v14  ;;  %v1950_v6 = vcvt.f32.s32 %v1949_v35  ;;  %v5090_v57 = vld [vmem:[#allocation58_spill] sm:$0xff] }
 0x454   : > { %v5091_v14 = vld [vmem:[#allocation26_spill] sm:$0xff] }
 0x455   : > { %v2270_v34 = vcvt.s32.f32 %v1939_v28  ;;  %v1953_v0 = vadd.s32 %v1952_v11, %v1950_v6  ;;  %v2305_v35 = vsel %vm2294_vm1, %v5091_v14, %v5090_v57  ;;  %v1993_v11 = vcvt.f32.s32 %v4505_v3 }
 0x457   : > { %v2336_v32 = vsel %vm2327_vm2, %v2270_v34, %v2303_v55  ;;  %v2271_v18 = vcvt.s32.f32 %v1953_v0  ;;  %v5093_v34 = vld [vmem:[#allocation27_spill] sm:$0xff]  ;;  %v1994_v58 = vshll.u32 %v1993_v11, 16 }
 0x458   : > { %2400 = vst [vmem:[%s3779_s10 + $0x88] sm:$0xff] %v2336_v32  ;;  %v1963_v45 = vpop.xlane.xlu0 %1962  ;;  %v2306_v0 = vsel %vm2294_vm1, %v5093_v34, %v5092_v61 }
 0x459   : > { %v2337_v63 = vsel %vm2327_vm2, %v2271_v18, %v2304_v56  ;;  %v1964_v43 = vcvt.f32.s32 %v1963_v45  ;;  %v2008_v18 = vshll.u32 %v2007_v52, 16  ;;  %v2021_v56 = vcvt.f32.s32 %v4523_v31  ;;  %v5099_v52 = vld [vmem:[#allocation30_spill] sm:$0xff] }
 0x45a   : > { %2401 = vst [vmem:[%s3779_s10 + $0x98] sm:$0xff] %v2337_v63  ;;  %v1977_v27 = vpop.xlane.xlu1 %1976  ;;  %v5094_v63 = vld [vmem:[#allocation72_spill] sm:$0xff] }
 0x45b   : > { %v1967_v49 = vadd.s32 %v1966_v54, %v1964_v43  ;;  %v1978_v4 = vcvt.f32.s32 %v1977_v27  ;;  %v2307_v43 = vsel %vm2294_vm1, %v5095_v59, %v5094_v63  ;;  %v2035_v27 = vcvt.f32.s32 %v4527_v19 }
 0x45c   : > { %v2022_v57 = vshll.u32 %v2021_v56, 16 }
 0x45d   : > { %v2272_v39 = vcvt.s32.f32 %v1967_v49  ;;  %v1981_v21 = vadd.s32 %v1980_v46, %v1978_v4  ;;  %v5096_v4 = vld [vmem:[#allocation74_spill] sm:$0xff]  ;;  %v2036_v19 = vshll.u32 %v2035_v27, 16 }
 0x45f   : > { %v2338_v28 = vsel %vm2327_vm2, %v2272_v39, %v2305_v35  ;;  %v2273_v6 = vcvt.s32.f32 %v1981_v21  ;;  %v5097_v39 = vld [vmem:[#allocation29_spill] sm:$0xff] }
 0x460   : > { %2402 = vst [vmem:[%s3779_s10 + $0xa8] sm:$0xff] %v2338_v28  ;;  %v2308_v21 = vsel %vm2294_vm1, %v5097_v39, %v5096_v4 }
 0x461   : > { %v2339_v30 = vsel %vm2327_vm2, %v2273_v6, %v2306_v0  ;;  %v1991_v55 = vpop.xlane.xlu0 %1990  ;;  %v5098_v0 = vld [vmem:[#allocation71_spill] sm:$0xff] }
 0x462   : > { %2403 = vst [vmem:[%s3779_s10 + $0xb8] sm:$0xff] %v2339_v30  ;;  %v1992_v3 = vcvt.f32.s32 %v1991_v55  ;;  %v2309_v30 = vsel %vm2294_vm1, %v5099_v52, %v5098_v0  ;;  %v2049_v55 = vcvt.f32.s32 %v4533_v62 }
 0x463   : > { %v2005_v32 = vpop.xlane.xlu1 %2004 }
 0x464   : > { %v1995_v23 = vadd.s32 %v1994_v58, %v1992_v3  ;;  %v2006_v40 = vcvt.f32.s32 %v2005_v32  ;;  %v5100_v32 = vld [vmem:[#allocation73_spill] sm:$0xff] }
 0x466   : > { %v2274_v45 = vcvt.s32.f32 %v1995_v23  ;;  %v2009_v54 = vadd.s32 %v2008_v18, %v2006_v40  ;;  %v5101_v18 = vld [vmem:[#allocation31_spill] sm:$0xff]  ;;  %v2063_v40 = vcvt.f32.s32 %v4537_v13  ;;  %v5102_v13 = vld [vmem:[#allocation32_spill] sm:$0xff] }
 0x467   : > { %v2310_v23 = vsel %vm2294_vm1, %v5101_v18, %v5100_v32  ;;  %v2311_v39 = vsel %vm2294_vm1, %v5102_v13, %v4427_v60 }
 0x468   : > { %v2340_v46 = vsel %vm2327_vm2, %v2274_v45, %v2307_v43  ;;  %v2275_v49 = vcvt.s32.f32 %v2009_v54  ;;  %v2050_v54 = vshll.u32 %v2049_v55, 16  ;;  %v2064_v59 = vshll.u32 %v2063_v40, 16  ;;  %v5105_v40 = vld [vmem:[#allocation75_spill] sm:$0xff] }
 0x469   : > { %2404 = vst [vmem:[%s3779_s10 + $0xc8] sm:$0xff] %v2340_v46  ;;  %v2019_v31 = vpop.xlane.xlu0 %2018  ;;  %v2077_v46 = vcvt.f32.s32 %v4543_v9 }
 0x46a   : > { %v2341_v14 = vsel %vm2327_vm2, %v2275_v49, %v2308_v21  ;;  %v2020_v35 = vcvt.f32.s32 %v2019_v31  ;;  %v2091_v21 = vcvt.f32.s32 %v4548_v42 }
 0x46b   : > { %2405 = vst [vmem:[%s3779_s10 + $0xd8] sm:$0xff] %v2341_v14  ;;  %v2033_v11 = vpop.xlane.xlu1 %2032  ;;  %v5103_v14 = vld [vmem:[#allocation33_spill] sm:$0xff] }
 0x46c   : > { %v2023_v28 = vadd.s32 %v2022_v57, %v2020_v35  ;;  %v2034_v6 = vcvt.f32.s32 %v2033_v11  ;;  %v2312_v35 = vsel %vm2294_vm1, %v5103_v14, %v4434_v47  ;;  %v2078_v11 = vshll.u32 %v2077_v46, 16 }
 0x46e   : > { %v2276_v61 = vcvt.s32.f32 %v2023_v28  ;;  %v2037_v34 = vadd.s32 %v2036_v19, %v2034_v6  ;;  %v2105_v19 = vcvt.f32.s32 %v4552_v48  ;;  %v2092_v6 = vshll.u32 %v2091_v21, 16 }
 0x470   : > { %v2342_v58 = vsel %vm2327_vm2, %v2276_v61, %v2309_v30  ;;  %v2277_v3 = vcvt.s32.f32 %v2037_v34  ;;  %v2106_v52 = vshll.u32 %v2105_v19, 16  ;;  %v2161_v19 = vcvt.f32.s32 %v4572_v53  ;;  %v5110_v53 = vld [vmem:[#allocation44_spill] sm:$0xff] }
 0x471   : > { %2406 = vst [vmem:[%s3779_s10 + $0xe8] sm:$0xff] %v2342_v58  ;;  %v5104_v58 = vld [vmem:[#allocation34_spill] sm:$0xff] }
 0x472   : > { %v2343_v56 = vsel %vm2327_vm2, %v2277_v3, %v2310_v23  ;;  %v2047_v45 = vpop.xlane.xlu0 %2046  ;;  %v2313_v48 = vsel %vm2294_vm1, %v5104_v58, %v4425_v33  ;;  %v2119_v3 = vcvt.f32.s32 %v4558_v2 }
 0x473   : > { %2407 = vst [vmem:[%s3779_s10 + $0xf8] sm:$0xff] %v2343_v56  ;;  %v2048_v62 = vcvt.f32.s32 %v2047_v45  ;;  %v5106_v56 = vld [vmem:[#allocation35_spill] sm:$0xff] }
 0x474   : > { %v2061_v63 = vpop.xlane.xlu1 %2060  ;;  %v2314_v45 = vsel %vm2294_vm1, %v5106_v56, %v5105_v40 }
 0x475   : > { %v2051_v43 = vadd.s32 %v2050_v54, %v2048_v62  ;;  %v2062_v27 = vcvt.f32.s32 %v2061_v63  ;;  %v2133_v54 = vcvt.f32.s32 %v4562_v15  ;;  %v5107_v63 = vld [vmem:[#allocation36_spill] sm:$0xff] }
 0x476   : > { %v2315_v2 = vsel %vm2294_vm1, %v5107_v63, %v4457_v20  ;;  %v2217_v63 = vcvt.f32.s32 %v4592_v26 }
 0x477   : > { %v2278_v49 = vcvt.s32.f32 %v2051_v43  ;;  %v2065_v4 = vadd.s32 %v2064_v59, %v2062_v27  ;;  %v2120_v43 = vshll.u32 %v2119_v3, 16  ;;  %v2134_v15 = vshll.u32 %v2133_v54, 16 }
 0x478   : > { %v2218_v26 = vshll.u32 %v2217_v63, 16 }
 0x479   : > { %v2344_v31 = vsel %vm2327_vm2, %v2278_v49, %v2311_v39  ;;  %v2279_v57 = vcvt.s32.f32 %v2065_v4 }
 0x47a   : > { %2408 = vst [vmem:[%s3779_s10 + $0x108] sm:$0xff] %v2344_v31  ;;  %v2075_v9 = vpop.xlane.xlu0 %2074  ;;  %v5108_v31 = vld [vmem:[#allocation41_spill] sm:$0xff] }
 0x47b   : > { %v2345_v28 = vsel %vm2327_vm2, %v2279_v57, %v2312_v35  ;;  %v2076_v60 = vcvt.f32.s32 %v2075_v9  ;;  %v2316_v20 = vsel %vm2294_vm1, %v5108_v31, %v4464_v12  ;;  %v2147_v57 = vcvt.f32.s32 %v4568_v7  ;;  %v5109_v9 = vld [vmem:[#allocation42_spill] sm:$0xff]  ;;  %v5114_v31 = vld [vmem:[#allocation56_spill] sm:$0xff] }
 0x47c   : > { %2409 = vst [vmem:[%s3779_s10 + $0x118] sm:$0xff] %v2345_v28  ;;  %v2089_v42 = vpop.xlane.xlu1 %2088 }
 0x47d   : > { %v2079_v61 = vadd.s32 %v2078_v11, %v2076_v60  ;;  %v2090_v34 = vcvt.f32.s32 %v2089_v42  ;;  %v2317_v11 = vsel %vm2294_vm1, %v5109_v9, %v4453_v16  ;;  %v2148_v12 = vshll.u32 %v2147_v57, 16 }
 0x47e   : > { %v2103_v0 = vpop.xlane.xlu0 %2102 }
 0x47f   : > { %v2280_v30 = vcvt.s32.f32 %v2079_v61  ;;  %v2093_v47 = vadd.s32 %v2092_v6, %v2090_v34  ;;  %v2104_v55 = vcvt.f32.s32 %v2103_v0  ;;  %v2162_v6 = vshll.u32 %v2161_v19, 16 }
 0x480   : > { %v2175_v0 = vcvt.f32.s32 %v4578_v44 }
 0x481   : > { %v2346_v32 = vsel %vm2327_vm2, %v2280_v30, %v2313_v48  ;;  %v2281_v18 = vcvt.s32.f32 %v2093_v47  ;;  %v2107_v23 = vadd.s32 %v2106_v52, %v2104_v55  ;;  %v2318_v30 = vsel %vm2294_vm1, %v5110_v53, %v4461_v22  ;;  %v5111_v48 = vld [vmem:[#allocation45_spill] sm:$0xff] }
 0x482   : > { %2410 = vst [vmem:[%s3779_s10 + $0x128] sm:$0xff] %v2346_v32  ;;  %v2189_v47 = vcvt.f32.s32 %v4582_v25  ;;  %v2319_v3 = vsel %vm2294_vm1, %v5111_v48, %v4483_v50  ;;  %v2176_v32 = vshll.u32 %v2175_v0, 16  ;;  %v5112_v50 = vld [vmem:[#allocation50_spill] sm:$0xff] }
 0x483   : > { %v2347_v62 = vsel %vm2327_vm2, %v2281_v18, %v2314_v45  ;;  %v2282_v33 = vcvt.s32.f32 %v2107_v23  ;;  %v2203_v45 = vcvt.f32.s32 %v4588_v10 }
 0x484   : > { %2411 = vst [vmem:[%s3779_s10 + $0x138] sm:$0xff] %v2347_v62  ;;  %v2117_v59 = vpop.xlane.xlu1 %2116  ;;  %v2190_v25 = vshll.u32 %v2189_v47, 16 }
 0x485   : > { %v2348_v27 = vsel %vm2327_vm2, %v2282_v33, %v2315_v2  ;;  %v2118_v46 = vcvt.f32.s32 %v2117_v59  ;;  %v2320_v33 = vsel %vm2294_vm1, %v5112_v50, %v4491_v8 }
 0x486   : > { %2412 = vst [vmem:[%s3779_s10 + $0x148] sm:$0xff] %v2348_v27  ;;  %v2131_v49 = vpop.xlane.xlu0 %2130 }
 0x487   : > { %v2121_v4 = vadd.s32 %v2120_v43, %v2118_v46  ;;  %v2132_v13 = vcvt.f32.s32 %v2131_v49  ;;  %v5113_v43 = vld [vmem:[#allocation52_spill] sm:$0xff]  ;;  %v2204_v46 = vshll.u32 %v2203_v45, 16 }
 0x488   : > { %v2321_v27 = vsel %vm2294_vm1, %v5113_v43, %v4479_v29  ;;  %v2322_v29 = vsel %vm2294_vm1, %v5114_v31, %v4487_v17 }
 0x489   : > { %v2283_v39 = vcvt.s32.f32 %v2121_v4  ;;  %v2135_v21 = vadd.s32 %v2134_v15, %v2132_v13 }
 0x48b   : > { %v2349_v14 = vsel %vm2327_vm2, %v2283_v39, %v2316_v20  ;;  %v2284_v35 = vcvt.s32.f32 %v2135_v21  ;;  %v2231_v20 = vcvt.f32.s32 %v4598_v1 }
 0x48c   : > { %2413 = vst [vmem:[%s3779_s10 + $0x158] sm:$0xff] %v2349_v14 }
 0x48d   : > { %v2350_v28 = vsel %vm2327_vm2, %v2284_v35, %v2317_v11  ;;  %v2145_v60 = vpop.xlane.xlu1 %2144  ;;  %v5115_v35 = vld [vmem:[#allocation57_spill] sm:$0xff]  ;;  %v2245_v11 = vcvt.f32.s32 %v4602_v37  ;;  %v2232_v17 = vshll.u32 %v2231_v20, 16 }
 0x48e   : > { %2414 = vst [vmem:[%s3779_s10 + $0x168] sm:$0xff] %v2350_v28  ;;  %v2146_v7 = vcvt.f32.s32 %v2145_v60  ;;  %v2323_v9 = vsel %vm2294_vm1, %v5115_v35, %v4511_v41  ;;  %v2259_v41 = vcvt.f32.s32 %v4607_v36 }
 0x48f   : > { %v2159_v42 = vpop.xlane.xlu0 %2158 }
 0x490   : > { %v2149_v61 = vadd.s32 %v2148_v12, %v2146_v7  ;;  %v2160_v34 = vcvt.f32.s32 %v2159_v42  ;;  %v2246_v12 = vshll.u32 %v2245_v11, 16 }
 0x492   : > { %v2285_v52 = vcvt.s32.f32 %v2149_v61  ;;  %v2163_v16 = vadd.s32 %v2162_v6, %v2160_v34  ;;  %v5116_v61 = vld [vmem:[#allocation62_spill] sm:$0xff] }
 0x493   : > { %v2324_v34 = vsel %vm2294_vm1, %v5116_v61, %v4519_v5 }
 0x494   : > { %v2351_v55 = vsel %vm2327_vm2, %v2285_v52, %v2318_v30  ;;  %v2286_v58 = vcvt.s32.f32 %v2163_v16  ;;  %v5117_v16 = vld [vmem:[#allocation64_spill] sm:$0xff]  ;;  %v2260_v30 = vshll.u32 %v2259_v41, 16 }
 0x495   : > { %2415 = vst [vmem:[%s3779_s10 + $0x178] sm:$0xff] %v2351_v55  ;;  %v2173_v44 = vpop.xlane.xlu1 %2172  ;;  %v2325_v53 = vsel %vm2294_vm1, %v5117_v16, %v4507_v38  ;;  %v5118_v38 = vld [vmem:[#allocation68_spill] sm:$0xff] }
 0x496   : > { %v2352_v18 = vsel %vm2327_vm2, %v2286_v58, %v2319_v3  ;;  %v2174_v23 = vcvt.f32.s32 %v2173_v44  ;;  %v2326_v48 = vsel %vm2294_vm1, %v5118_v38, %v4515_v24 }
 0x497   : > { %2416 = vst [vmem:[%s3779_s10 + $0x188] sm:$0xff] %v2352_v18  ;;  %v2187_v22 = vpop.xlane.xlu0 %2186 }
 0x498   : > { %v2177_v40 = vadd.s32 %v2176_v32, %v2174_v23  ;;  %v2188_v56 = vcvt.f32.s32 %v2187_v22 }
 0x49a   : > { %v2287_v54 = vcvt.s32.f32 %v2177_v40  ;;  %v2191_v62 = vadd.s32 %v2190_v25, %v2188_v56 }
 0x49c   : > { %v2353_v2 = vsel %vm2327_vm2, %v2287_v54, %v2320_v33  ;;  %v2288_v59 = vcvt.s32.f32 %v2191_v62 }
 0x49d   : > { %2417 = vst [vmem:[%s3779_s10 + $0x198] sm:$0xff] %v2353_v2  ;;  %v2201_v10 = vpop.xlane.xlu1 %2200 }
 0x49e   : > { %v2354_v49 = vsel %vm2327_vm2, %v2288_v59, %v2321_v27  ;;  %v2202_v15 = vcvt.f32.s32 %v2201_v10 }
 0x49f   : > { %2418 = vst [vmem:[%s3779_s10 + $0x1a8] sm:$0xff] %v2354_v49  ;;  %v2215_v8 = vpop.xlane.xlu0 %2214 }
 0x4a0   : > { %v2205_v4 = vadd.s32 %v2204_v46, %v2202_v15  ;;  %v2216_v13 = vcvt.f32.s32 %v2215_v8 }
 0x4a2   : > { %v2289_v39 = vcvt.s32.f32 %v2205_v4  ;;  %v2219_v21 = vadd.s32 %v2218_v26, %v2216_v13 }
 0x4a4   : > { %v2355_v57 = vsel %vm2327_vm2, %v2289_v39, %v2322_v29  ;;  %v2290_v14 = vcvt.s32.f32 %v2219_v21 }
 0x4a5   : > { %2419 = vst [vmem:[%s3779_s10 + $0x1b8] sm:$0xff] %v2355_v57 }
 0x4a6   : > { %v2356_v19 = vsel %vm2327_vm2, %v2290_v14, %v2323_v9  ;;  %v2229_v28 = vpop.xlane.xlu1 %2228 }
 0x4a7   : > { %2420 = vst [vmem:[%s3779_s10 + $0x1c8] sm:$0xff] %v2356_v19  ;;  %v2230_v1 = vcvt.f32.s32 %v2229_v28 }
 0x4a8   : > { %v2243_v60 = vpop.xlane.xlu0 %2242 }
 0x4a9   : > { %v2233_v7 = vadd.s32 %v2232_v17, %v2230_v1  ;;  %v2244_v42 = vcvt.f32.s32 %v2243_v60 }
 0x4ab   : > { %v2291_v6 = vcvt.s32.f32 %v2233_v7  ;;  %v2247_v37 = vadd.s32 %v2246_v12, %v2244_v42 }
 0x4ad   : > { %v2357_v0 = vsel %vm2327_vm2, %v2291_v6, %v2324_v34  ;;  %v2292_v52 = vcvt.s32.f32 %v2247_v37  ;;  %v2257_v36 = vpop.xlane.xlu1 %2256 }
 0x4ae   : > { %2421 = vst [vmem:[%s3779_s10 + $0x1d8] sm:$0xff] %v2357_v0  ;;  %v2258_v55 = vcvt.f32.s32 %v2257_v36 }
 0x4af   : > { %v2358_v47 = vsel %vm2327_vm2, %v2292_v52, %v2325_v53 }
 0x4b0   : > { %2422 = vst [vmem:[%s3779_s10 + $0x1e8] sm:$0xff] %v2358_v47  ;;  %v2261_v5 = vadd.s32 %v2260_v30, %v2258_v55 }
 0x4b2   : > { %v2293_v58 = vcvt.s32.f32 %v2261_v5 }
 0x4b4   : > { %v2359_v3 = vsel %vm2327_vm2, %v2293_v58, %v2326_v48 }
 0x4b5   : > { %2423 = vst [vmem:[%s3779_s10 + $0x1f8] sm:$0xff] %v2359_v3 }
 0x4b6   : > { %3349 = shalt.err (!%p3346_p4)
}
 0x4b7   : > { %s3350_s27 = scalar_lea.hbm %s4867_s8, 8192  ;;  %s3354_s19 = scalar_lea.hbm %s4926_s6, 16384 }
 0x4b8   : > { %p3351_p9 = scmp.ne.s32.totalorder %s4867_s8, %s3350_s27  ;;  %p3355_p8 = scmp.lt.u32.totalorder %s4867_s8, %s4926_s6 }
 0x4b9   : > { %p3356_p13 = scmp.lt.u32.totalorder %s3354_s19, %s3350_s27  ;;  %p3358_p10 = scmp.lt.u32.totalorder %s3350_s27, %s4867_s8 }
 0x4ba   : > { %p3352_p0 = pnand %p3351_p9, %p3607_p5 }
 0x4bb   : > { %p3357_p6 = por %p3356_p13, %p3355_p8 }
 0x4bc   : > { %p3353_p11 = pneg %p3352_p0 }
 0x4bd   : > { %p3359_p3 = por %p3358_p10, %p3357_p6 }
 0x4bf   : > { %p3360_p7 = pnand %p3359_p3, %p3353_p11 }
 0x4c1   : > { %3363 = shalt.err (!%p3360_p7)
}
 0x4c2   : > { %s3422_s1 = smov 256   ;;  %s3423_s11 = smov 16  }
 0x4c3   : > { %2836 = dma.vmem_to_hbm [thread:$0]  (%p3607_p5), %s4869_s26, 8192, %s4867_s8, %s2425_s25, %s3422_s1, %s3422_s1, %s3423_s11  }
 0x4c4 PF: > { %s2454_s7 = sand.u32 1, %s3398_s21   ;;  %p5119_p12 = scmp.ne.s32.totalorder %s4981_s28, 0 }
 0x4c5   : > { %p5120_p1 = scmp.ge.s32.totalorder %s3410_s24, 2  ;;  %s2455_s12 = scalar_lea.sflag [#allocation4], %s2454_s7 }
 0x4c7   : > { %p2853_p2 = pnand %p5120_p1, %p5119_p12 }
 0x4c9   : > { %3393 = dma.done.wait (!%p2853_p2), %s2455_s12, 8192  }
 0x4ca   : > { %3395 = vsyncadd (!%p2853_p2), %s2455_s12, 4294959104  ;;  %p21_p4 = scmp.ge.s32.totalorder %s3572_s14, 4   ;;  %s5121_s21 = smov %s3402_s22 }
 0x4cb   : > { %s5122_s22 = smov %s3406_s23  ;;  %s5123_s23 = smov %s3603_s30 }
 0x4cc   : > { %s5124_s24 = smov %s3572_s14  ;;  %23 = sbr.rel (!%p21_p4) target bundleno = 9 (0x9), region = 101 }
 0x4d3   :  { %2460 = vsyncpa [#allocation3], 1 }
 0x4d4   :  { %2462 = vsyncpa [#allocation3 + $0x1], 1 }
 0x4d5   :  { %2463 = vsyncpa [#allocation6], 1 }
 0x4d6   :  { %2464 = vsyncpa [#allocation9], 1 }
 0x4d7   :  { %2465 = vsyncpa [#allocation4], 1 }
 0x4d8   :  { %2467 = vsyncpa [#allocation4 + $0x1], 1 }

</bundles_post_ra>
